<compile_context>
chip_gen: v7x
topology: tpu7x:2x2x1
jax: 0.10.0
libtpu: 0.0.40
codegen_flags: <defaults>
</compile_context>

<pallas_src>
import jax
import jax.numpy as jnp
import numpy as np
from jax import lax
from jax.experimental import pallas as pl
from jax.experimental.pallas import tpu as pltpu


def _make_kernel(T, Bp, H, P, W, min_std, unroll):
    f32 = jnp.float32
    TB = T * Bp

    def kernel(state_ref, wih0f_ref, wih0b_ref, b0f_ref, b0b_ref, whh0bd_ref,
               wih1f_top_ref, wih1f_bot_ref, b1f_ref, whh1f_ref,
               wih1b_top_ref, wih1b_bot_ref, b1b_ref,
               wfc_top_ref, wfc_bot_ref, bfc_ref,
               out_ref, scr_f, scr_b):
        x = state_ref[...]                                   # (T*Bp, Fin)

        # ---- Hoisted layer-0 input projections: bias folded once, dotted
        # straight into the per-timestep scratches (no lane slicing).
        scr_f[...] = (jnp.dot(x, wih0f_ref[...], preferred_element_type=f32)
                      + b0f_ref[...]).reshape(T, Bp, H)
        scr_b[...] = (jnp.dot(x, wih0b_ref[...], preferred_element_type=f32)
                      + b0b_ref[...]).reshape(T, Bp, H)

        whh0bd = whh0bd_ref[...]                             # (2H, 2H) block-diag

        # ---- Layer 0: fwd & bwd chains fused into ONE (Bp,2H)@(2H,2H) matmul
        # per step (block-diagonal recurrent weight). Row t of scr_f holds
        # pre_f(t) then o0f(t); row t of scr_b holds pre_b(t) then o0b(t)
        # (time-aligned storage; read strictly precedes the in-place write).
        def l0_body(i, h2):
            pre = jnp.concatenate([scr_f[i], scr_b[T - 1 - i]], axis=-1)
            h2 = jnp.maximum(
                pre + jnp.dot(h2, whh0bd, preferred_element_type=f32), 0.0)
            scr_f[i] = h2[:, :H]
            scr_b[T - 1 - i] = h2[:, H:]
            return h2

        h2_last = lax.fori_loop(0, T, l0_body, jnp.zeros((Bp, 2 * H), f32),
                                unroll=unroll)
        hf_last = h2_last[:, :H]                             # o0f(T-1)
        ob_last = scr_b[T - 1]                               # o0b(T-1)

        # ---- Hoisted layer-1 forward input projection, overwriting scr_f in
        # place (o0f is dead beyond hf_last) — only two (T,Bp,H) scratches.
        # (Inter-layer dropout is identity in eval mode.)
        o0f = scr_f[...].reshape(TB, H)
        o0b = scr_b[...].reshape(TB, H)
        scr_f[...] = (jnp.dot(o0f, wih1f_top_ref[...],
                              preferred_element_type=f32)
                      + b1f_ref[...]).reshape(T, Bp, H)
        scr_f[...] += jnp.dot(o0b, wih1f_bot_ref[...],
                              preferred_element_type=f32).reshape(T, Bp, H)

        whh1f = whh1f_ref[...]

        def l1_body(t, h):
            return jnp.maximum(
                scr_f[t] + jnp.dot(h, whh1f, preferred_element_type=f32), 0.0)

        h1f_last = lax.fori_loop(0, T, l1_body, jnp.zeros((Bp, H), f32),
                                 unroll=unroll)

        # ---- Layer 1, backward direction. Downstream only consumes x[:, -1];
        # for the reversed direction t = T-1 is its *first* recurrence step
        # (h0 = 0), so a single cell evaluation suffices (no whh term).
        h1b_last = jnp.maximum(
            jnp.dot(hf_last, wih1b_top_ref[...], preferred_element_type=f32)
            + jnp.dot(ob_last, wih1b_bot_ref[...], preferred_element_type=f32)
            + b1b_ref[...], 0.0)

        # ---- Gaussian head + single lane-dense output slab
        # [mean | std | x_last_f | x_last_b | zero pad] of width W (mult of 128).
        fc = (jnp.dot(h1f_last, wfc_top_ref[...], preferred_element_type=f32)
              + jnp.dot(h1b_last, wfc_bot_ref[...], preferred_element_type=f32)
              + bfc_ref[...])                                # (Bp, 2P)
        col = lax.broadcasted_iota(jnp.int32, (Bp, 2 * P), 1)
        ms = jnp.where(col < P, fc, jax.nn.softplus(fc) + min_std)

        parts = [ms, h1f_last, h1b_last]
        pad = W - (2 * P + 2 * H)
        if pad > 0:
            parts.append(jnp.zeros((Bp, pad), f32))
        out_ref[...] = jnp.concatenate(parts, axis=-1)

    return kernel


def plan_recognition_forward(state, params, *, min_std=1e-4):
    """state: (B, T, F_in) float32 (batch_first, like the PyTorch module).

    Returns (mean, std, x_last); Independent(Normal(mean, std), 1) is the
    distribution the module would wrap around (mean, std).
    """
    B, T, Fin = state.shape
    H = params["whh_l0"].shape[0]
    P = params["w_fc"].shape[0] // 2
    Bp = ((B + 7) // 8) * 8                     # pad batch to a sublane multiple
    W = ((2 * P + 2 * H + 127) // 128) * 128    # lane-dense output slab width
    unroll = max(1, min(8, T))

    # Time-major, batch padded, flattened to (T*Bp, Fin): row t*Bp + b = state[b, t].
    st = jnp.transpose(state, (1, 0, 2)).astype(jnp.float32)     # (T, B, Fin)
    st = jnp.pad(st, ((0, 0), (0, Bp - B), (0, 0)))
    state2d = st.reshape(T * Bp, Fin)

    def tr(name):                 # PyTorch (out, in) -> (in, out) for x @ W
        return jnp.transpose(params[name]).astype(jnp.float32)

    def bias(ih, hh):             # b_ih + b_hh always add together
        return (params[ih] + params[hh]).reshape(1, -1).astype(jnp.float32)

    # Block-diagonal recurrent weight for the fused layer-0 fwd/bwd chain.
    whh0_bd = jnp.zeros((2 * H, 2 * H), jnp.float32)
    whh0_bd = whh0_bd.at[:H, :H].set(tr("whh_l0"))
    whh0_bd = whh0_bd.at[H:, H:].set(tr("whh_l0r"))

    wih1f = tr("wih_l1")     # (2H, H)
    wih1b = tr("wih_l1r")    # (2H, H)
    wfc = tr("w_fc")         # (2H, 2P)

    # TODO(synk): cast weight args to bf16 on v6e/v7x (keep f32 accumulation);
    # kept f32 here so the 1e-4 self-check against the f32 reference passes.
    args = [
        state2d,
        tr("wih_l0"), tr("wih_l0r"),
        bias("bih_l0", "bhh_l0"), bias("bih_l0r", "bhh_l0r"),
        whh0_bd,
        wih1f[:H], wih1f[H:], bias("bih_l1", "bhh_l1"), tr("whh_l1"),
        wih1b[:H], wih1b[H:], bias("bih_l1r", "bhh_l1r"),
        wfc[:H], wfc[H:], params["b_fc"].reshape(1, -1).astype(jnp.float32),
    ]

    # Size the scoped-VMEM limit to the actual resident footprint, capped by
    # the device capacity (no blanket 2x — there is no grid double-buffering).
    def padded_bytes(shape):
        if len(shape) == 1:
            lead, r, c = 1, 1, shape[0]
        else:
            lead = int(np.prod(shape[:-2])) if len(shape) > 2 else 1
            r, c = shape[-2], shape[-1]
        return lead * ((r + 7) // 8 * 8) * ((c + 127) // 128 * 128) * 4

    shapes = [tuple(a.shape) for a in args] + [
        (Bp, W),                                  # output slab
        (T, Bp, H), (T, Bp, H),                   # scratches
    ]
    footprint = sum(padded_bytes(s) for s in shapes)
    try:
        cap = int(pltpu.get_tpu_info().vmem_capacity_bytes)
    except Exception:
        cap = 64 * 1024 * 1024                    # conservative (v7x-sized)
    vmem_limit = int(min(cap - 8 * 1024 * 1024,
                         max(footprint + 4 * 1024 * 1024, 16 * 1024 * 1024)))

    vmem = pl.BlockSpec(memory_space=pltpu.MemorySpace.VMEM)
    slab = pl.pallas_call(
        _make_kernel(T, Bp, H, P, W, float(min_std), unroll),
        out_shape=jax.ShapeDtypeStruct((Bp, W), jnp.float32),
        in_specs=[vmem] * len(args),
        out_specs=vmem,
        scratch_shapes=[pltpu.VMEM((T, Bp, H), jnp.float32),   # l0 fwd pre->out, then l1 pre
                        pltpu.VMEM((T, Bp, H), jnp.float32)],  # l0 bwd pre->out
        compiler_params=pltpu.CompilerParams(vmem_limit_bytes=vmem_limit),
    )(*args)

    mean = slab[:B, :P]
    std = slab[:B, P:2 * P]
    x_last = slab[:B, 2 * P:2 * P + 2 * H]
    return mean, std, x_last


# --------------------- pure-JAX reference (for checking) ---------------------
def _reference(state, params, *, min_std=1e-4):
    state_tm = jnp.transpose(state, (1, 0, 2))
    P = params["w_fc"].shape[0] // 2

    def run_cell(x_seq, wih, whh, bih, bhh):
        def step(h, x):
            h = jnp.maximum(x @ wih.T + h @ whh.T + bih + bhh, 0.0)
            return h, h
        h0 = jnp.zeros((x_seq.shape[1], whh.shape[0]), jnp.float32)
        _, ys = lax.scan(step, h0, x_seq)
        return ys

    o0f = run_cell(state_tm, params["wih_l0"], params["whh_l0"],
                   params["bih_l0"], params["bhh_l0"])
    o0b = run_cell(state_tm[::-1], params["wih_l0r"], params["whh_l0r"],
                   params["bih_l0r"], params["bhh_l0r"])[::-1]
    in1 = jnp.concatenate([o0f, o0b], axis=-1)
    o1f = run_cell(in1, params["wih_l1"], params["whh_l1"],
                   params["bih_l1"], params["bhh_l1"])
    o1b = run_cell(in1[::-1], params["wih_l1r"], params["whh_l1r"],
                   params["bih_l1r"], params["bhh_l1r"])[::-1]
    x = jnp.concatenate([o1f, o1b], axis=-1)
    x_last = x[-1]                                           # == x[:, -1] batch_first
    fc = x_last @ params["w_fc"].T + params["b_fc"]
    mean = fc[:, :P]
    std = jax.nn.softplus(fc[:, P:]) + min_std
    return mean, std, x_last


def _init_params(key, in_features, hidden_size, plan_features):
    stdv = 1.0 / np.sqrt(hidden_size)
    shapes = {
        "wih_l0":  (hidden_size, in_features),
        "whh_l0":  (hidden_size, hidden_size),
        "bih_l0":  (hidden_size,), "bhh_l0": (hidden_size,),
        "wih_l0r": (hidden_size, in_features),
        "whh_l0r": (hidden_size, hidden_size),
        "bih_l0r": (hidden_size,), "bhh_l0r": (hidden_size,),
        "wih_l1":  (hidden_size, 2 * hidden_size),
        "whh_l1":  (hidden_size, hidden_size),
        "bih_l1":  (hidden_size,), "bhh_l1": (hidden_size,),
        "wih_l1r": (hidden_size, 2 * hidden_size),
        "whh_l1r": (hidden_size, hidden_size),
        "bih_l1r": (hidden_size,), "bhh_l1r": (hidden_size,),
        "w_fc":    (2 * plan_features, 2 * hidden_size),
        "b_fc":    (2 * plan_features,),
    }
    params = {}
    for name, shape in shapes.items():
        key, sub = jax.random.split(key)
        params[name] = jax.random.uniform(sub, shape, jnp.float32, -stdv, stdv)
    return params


if __name__ == "__main__":
    B, T = 2, 8
    in_features, hidden_size, plan_features = 32, 32, 16
    min_std = 1e-4

    key = jax.random.PRNGKey(0)
    k_x, k_p = jax.random.split(key)
    state = jax.random.normal(k_x, (B, T, in_features), jnp.float32)
    params = _init_params(k_p, in_features, hidden_size, plan_features)

    mean, std, x_last = plan_recognition_forward(state, params, min_std=min_std)
    jax.block_until_ready((mean, std, x_last))

    r_mean, r_std, r_x = _reference(state, params, min_std=min_std)
    np.testing.assert_allclose(np.asarray(mean), np.asarray(r_mean), rtol=1e-4, atol=1e-4)
    np.testing.assert_allclose(np.asarray(std), np.asarray(r_std), rtol=1e-4, atol=1e-4)
    np.testing.assert_allclose(np.asarray(x_last), np.asarray(r_x), rtol=1e-4, atol=1e-4)

    print("KERNEL_OK")
</pallas_src>

<mosaic_0001>
module attributes {stable_mosaic.version = 11 : i64} {
  func.func @kernel(%arg0: memref<64x32xf32, #tpu.memory_space<vmem>>, %arg1: memref<32x32xf32, #tpu.memory_space<vmem>>, %arg2: memref<32x32xf32, #tpu.memory_space<vmem>>, %arg3: memref<1x32xf32, #tpu.memory_space<vmem>>, %arg4: memref<1x32xf32, #tpu.memory_space<vmem>>, %arg5: memref<64x64xf32, #tpu.memory_space<vmem>>, %arg6: memref<32x32xf32, #tpu.memory_space<vmem>>, %arg7: memref<32x32xf32, #tpu.memory_space<vmem>>, %arg8: memref<1x32xf32, #tpu.memory_space<vmem>>, %arg9: memref<32x32xf32, #tpu.memory_space<vmem>>, %arg10: memref<32x32xf32, #tpu.memory_space<vmem>>, %arg11: memref<32x32xf32, #tpu.memory_space<vmem>>, %arg12: memref<1x32xf32, #tpu.memory_space<vmem>>, %arg13: memref<32x32xf32, #tpu.memory_space<vmem>>, %arg14: memref<32x32xf32, #tpu.memory_space<vmem>>, %arg15: memref<1x32xf32, #tpu.memory_space<vmem>>, %arg16: memref<8x128xf32, #tpu.memory_space<vmem>>, %arg17: memref<8x8x32xf32, #tpu.memory_space<vmem>>, %arg18: memref<8x8x32xf32, #tpu.memory_space<vmem>>) attributes {dimension_semantics = [], scalar_prefetch = 0 : i64, scratch_operands = 2 : i64, tpu.core_type = #tpu.core_type<tc>} {
    %c0 = arith.constant 0 : index
    %c0_0 = arith.constant 0 : index
    %0 = vector.load %arg0[%c0, %c0_0] : memref<64x32xf32, #tpu.memory_space<vmem>>, vector<64x32xf32>
    %c0_1 = arith.constant 0 : index
    %c0_2 = arith.constant 0 : index
    %1 = vector.load %arg1[%c0_1, %c0_2] : memref<32x32xf32, #tpu.memory_space<vmem>>, vector<32x32xf32>
    %cst = arith.constant dense<0.000000e+00> : vector<64x32xf32>
    %2 = tpu.matmul %0, %1, %cst {dimension_numbers = #tpu.dot_dimension_numbers<[1], [0], [0], [1], [0, 0, 1, 1], [], []>} : vector<64x32xf32>, vector<32x32xf32>, vector<64x32xf32> -> vector<64x32xf32>
    %c0_3 = arith.constant 0 : index
    %c0_4 = arith.constant 0 : index
    %3 = vector.load %arg3[%c0_3, %c0_4] : memref<1x32xf32, #tpu.memory_space<vmem>>, vector<1x32xf32>
    %4 = vector.broadcast %3 : vector<1x32xf32> to vector<64x32xf32>
    %5 = arith.addf %2, %4 : vector<64x32xf32>
    %6 = vector.shape_cast %5 : vector<64x32xf32> to vector<8x8x32xf32>
    %c0_5 = arith.constant 0 : index
    %c0_6 = arith.constant 0 : index
    %c0_7 = arith.constant 0 : index
    %7 = vector.load %arg17[%c0_5, %c0_6, %c0_7] : memref<8x8x32xf32, #tpu.memory_space<vmem>>, vector<8x8x32xf32>
    tpu.vector_store %arg17[%c0_5, %c0_6, %c0_7], %6 {strides = array<i32>} : memref<8x8x32xf32, #tpu.memory_space<vmem>>, vector<8x8x32xf32>,
    %c0_8 = arith.constant 0 : index
    %c0_9 = arith.constant 0 : index
    %8 = vector.load %arg2[%c0_8, %c0_9] : memref<32x32xf32, #tpu.memory_space<vmem>>, vector<32x32xf32>
    %cst_10 = arith.constant dense<0.000000e+00> : vector<64x32xf32>
    %9 = tpu.matmul %0, %8, %cst_10 {dimension_numbers = #tpu.dot_dimension_numbers<[1], [0], [0], [1], [0, 0, 1, 1], [], []>} : vector<64x32xf32>, vector<32x32xf32>, vector<64x32xf32> -> vector<64x32xf32>
    %c0_11 = arith.constant 0 : index
    %c0_12 = arith.constant 0 : index
    %10 = vector.load %arg4[%c0_11, %c0_12] : memref<1x32xf32, #tpu.memory_space<vmem>>, vector<1x32xf32>
    %11 = vector.broadcast %10 : vector<1x32xf32> to vector<64x32xf32>
    %12 = arith.addf %9, %11 : vector<64x32xf32>
    %13 = vector.shape_cast %12 : vector<64x32xf32> to vector<8x8x32xf32>
    %c0_13 = arith.constant 0 : index
    %c0_14 = arith.constant 0 : index
    %c0_15 = arith.constant 0 : index
    %14 = vector.load %arg18[%c0_13, %c0_14, %c0_15] : memref<8x8x32xf32, #tpu.memory_space<vmem>>, vector<8x8x32xf32>
    tpu.vector_store %arg18[%c0_13, %c0_14, %c0_15], %13 {strides = array<i32>} : memref<8x8x32xf32, #tpu.memory_space<vmem>>, vector<8x8x32xf32>,
    %c0_16 = arith.constant 0 : index
    %c0_17 = arith.constant 0 : index
    %15 = vector.load %arg5[%c0_16, %c0_17] : memref<64x64xf32, #tpu.memory_space<vmem>>, vector<64x64xf32>
    %cst_18 = arith.constant 0.000000e+00 : f32
    %16 = vector.broadcast %cst_18 : f32 to vector<8x64xf32>
    %c0_i32 = arith.constant 0 : i32
    %17 = arith.index_cast %c0_i32 : i32 to index
    %c0_19 = arith.constant 0 : index
    %c0_20 = arith.constant 0 : index
    %18 = vector.load %arg17[%17, %c0_19, %c0_20] : memref<8x8x32xf32, #tpu.memory_space<vmem>>, vector<1x8x32xf32>
    %19 = vector.shape_cast %18 : vector<1x8x32xf32> to vector<8x32xf32>
    %c7_i32 = arith.constant 7 : i32
    %20 = arith.subi %c7_i32, %c0_i32 : i32
    %21 = arith.index_cast %20 : i32 to index
    %c0_21 = arith.constant 0 : index
    %c0_22 = arith.constant 0 : index
    %22 = vector.load %arg18[%21, %c0_21, %c0_22] : memref<8x8x32xf32, #tpu.memory_space<vmem>>, vector<1x8x32xf32>
    %23 = vector.shape_cast %22 : vector<1x8x32xf32> to vector<8x32xf32>
    %24 = tpu.concatenate %19, %23 in 1 : vector<8x32xf32>, vector<8x32xf32> -> vector<8x64xf32>
    %cst_23 = arith.constant dense<0.000000e+00> : vector<8x64xf32>
    %25 = tpu.matmul %16, %15, %cst_23 {dimension_numbers = #tpu.dot_dimension_numbers<[1], [0], [0], [1], [0, 0, 1, 1], [], []>} : vector<8x64xf32>, vector<64x64xf32>, vector<8x64xf32> -> vector<8x64xf32>
    %26 = arith.addf %24, %25 : vector<8x64xf32>
    %cst_24 = arith.constant 0.000000e+00 : f32
    %27 = vector.broadcast %cst_24 : f32 to vector<8x64xf32>
    %28 = arith.maximumf %26, %27 : vector<8x64xf32>
    %29 = vector.extract_strided_slice %28 {offsets = [0, 0], sizes = [8, 32], strides = [1, 1]} : vector<8x64xf32> to vector<8x32xf32>
    %30 = arith.index_cast %c0_i32 : i32 to index
    %c0_25 = arith.constant 0 : index
    %c0_26 = arith.constant 0 : index
    %31 = vector.load %arg17[%30, %c0_25, %c0_26] : memref<8x8x32xf32, #tpu.memory_space<vmem>>, vector<1x8x32xf32>
    %32 = vector.shape_cast %31 : vector<1x8x32xf32> to vector<8x32xf32>
    %33 = vector.shape_cast %29 : vector<8x32xf32> to vector<1x8x32xf32>
    tpu.vector_store %arg17[%30, %c0_25, %c0_26], %33 {strides = array<i32>} : memref<8x8x32xf32, #tpu.memory_space<vmem>>, vector<1x8x32xf32>,
    %34 = vector.extract_strided_slice %28 {offsets = [0, 32], sizes = [8, 32], strides = [1, 1]} : vector<8x64xf32> to vector<8x32xf32>
    %c7_i32_27 = arith.constant 7 : i32
    %35 = arith.subi %c7_i32_27, %c0_i32 : i32
    %36 = arith.index_cast %35 : i32 to index
    %c0_28 = arith.constant 0 : index
    %c0_29 = arith.constant 0 : index
    %37 = vector.load %arg18[%36, %c0_28, %c0_29] : memref<8x8x32xf32, #tpu.memory_space<vmem>>, vector<1x8x32xf32>
    %38 = vector.shape_cast %37 : vector<1x8x32xf32> to vector<8x32xf32>
    %39 = vector.shape_cast %34 : vector<8x32xf32> to vector<1x8x32xf32>
    tpu.vector_store %arg18[%36, %c0_28, %c0_29], %39 {strides = array<i32>} : memref<8x8x32xf32, #tpu.memory_space<vmem>>, vector<1x8x32xf32>,
    %c1_i32 = arith.constant 1 : i32
    %40 = arith.index_cast %c1_i32 : i32 to index
    %c0_30 = arith.constant 0 : index
    %c0_31 = arith.constant 0 : index
    %41 = vector.load %arg17[%40, %c0_30, %c0_31] : memref<8x8x32xf32, #tpu.memory_space<vmem>>, vector<1x8x32xf32>
    %42 = vector.shape_cast %41 : vector<1x8x32xf32> to vector<8x32xf32>
    %c7_i32_32 = arith.constant 7 : i32
    %43 = arith.subi %c7_i32_32, %c1_i32 : i32
    %44 = arith.index_cast %43 : i32 to index
    %c0_33 = arith.constant 0 : index
    %c0_34 = arith.constant 0 : index
    %45 = vector.load %arg18[%44, %c0_33, %c0_34] : memref<8x8x32xf32, #tpu.memory_space<vmem>>, vector<1x8x32xf32>
    %46 = vector.shape_cast %45 : vector<1x8x32xf32> to vector<8x32xf32>
    %47 = tpu.concatenate %42, %46 in 1 : vector<8x32xf32>, vector<8x32xf32> -> vector<8x64xf32>
    %cst_35 = arith.constant dense<0.000000e+00> : vector<8x64xf32>
    %48 = tpu.matmul %28, %15, %cst_35 {dimension_numbers = #tpu.dot_dimension_numbers<[1], [0], [0], [1], [0, 0, 1, 1], [], []>} : vector<8x64xf32>, vector<64x64xf32>, vector<8x64xf32> -> vector<8x64xf32>
    %49 = arith.addf %47, %48 : vector<8x64xf32>
    %cst_36 = arith.constant 0.000000e+00 : f32
    %50 = vector.broadcast %cst_36 : f32 to vector<8x64xf32>
    %51 = arith.maximumf %49, %50 : vector<8x64xf32>
    %52 = vector.extract_strided_slice %51 {offsets = [0, 0], sizes = [8, 32], strides = [1, 1]} : vector<8x64xf32> to vector<8x32xf32>
    %53 = arith.index_cast %c1_i32 : i32 to index
    %c0_37 = arith.constant 0 : index
    %c0_38 = arith.constant 0 : index
    %54 = vector.load %arg17[%53, %c0_37, %c0_38] : memref<8x8x32xf32, #tpu.memory_space<vmem>>, vector<1x8x32xf32>
    %55 = vector.shape_cast %54 : vector<1x8x32xf32> to vector<8x32xf32>
    %56 = vector.shape_cast %52 : vector<8x32xf32> to vector<1x8x32xf32>
    tpu.vector_store %arg17[%53, %c0_37, %c0_38], %56 {strides = array<i32>} : memref<8x8x32xf32, #tpu.memory_space<vmem>>, vector<1x8x32xf32>,
    %57 = vector.extract_strided_slice %51 {offsets = [0, 32], sizes = [8, 32], strides = [1, 1]} : vector<8x64xf32> to vector<8x32xf32>
    %c7_i32_39 = arith.constant 7 : i32
    %58 = arith.subi %c7_i32_39, %c1_i32 : i32
    %59 = arith.index_cast %58 : i32 to index
    %c0_40 = arith.constant 0 : index
    %c0_41 = arith.constant 0 : index
    %60 = vector.load %arg18[%59, %c0_40, %c0_41] : memref<8x8x32xf32, #tpu.memory_space<vmem>>, vector<1x8x32xf32>
    %61 = vector.shape_cast %60 : vector<1x8x32xf32> to vector<8x32xf32>
    %62 = vector.shape_cast %57 : vector<8x32xf32> to vector<1x8x32xf32>
    tpu.vector_store %arg18[%59, %c0_40, %c0_41], %62 {strides = array<i32>} : memref<8x8x32xf32, #tpu.memory_space<vmem>>, vector<1x8x32xf32>,
    %c2_i32 = arith.constant 2 : i32
    %63 = arith.index_cast %c2_i32 : i32 to index
    %c0_42 = arith.constant 0 : index
    %c0_43 = arith.constant 0 : index
    %64 = vector.load %arg17[%63, %c0_42, %c0_43] : memref<8x8x32xf32, #tpu.memory_space<vmem>>, vector<1x8x32xf32>
    %65 = vector.shape_cast %64 : vector<1x8x32xf32> to vector<8x32xf32>
    %c7_i32_44 = arith.constant 7 : i32
    %66 = arith.subi %c7_i32_44, %c2_i32 : i32
    %67 = arith.index_cast %66 : i32 to index
    %c0_45 = arith.constant 0 : index
    %c0_46 = arith.constant 0 : index
    %68 = vector.load %arg18[%67, %c0_45, %c0_46] : memref<8x8x32xf32, #tpu.memory_space<vmem>>, vector<1x8x32xf32>
    %69 = vector.shape_cast %68 : vector<1x8x32xf32> to vector<8x32xf32>
    %70 = tpu.concatenate %65, %69 in 1 : vector<8x32xf32>, vector<8x32xf32> -> vector<8x64xf32>
    %cst_47 = arith.constant dense<0.000000e+00> : vector<8x64xf32>
    %71 = tpu.matmul %51, %15, %cst_47 {dimension_numbers = #tpu.dot_dimension_numbers<[1], [0], [0], [1], [0, 0, 1, 1], [], []>} : vector<8x64xf32>, vector<64x64xf32>, vector<8x64xf32> -> vector<8x64xf32>
    %72 = arith.addf %70, %71 : vector<8x64xf32>
    %cst_48 = arith.constant 0.000000e+00 : f32
    %73 = vector.broadcast %cst_48 : f32 to vector<8x64xf32>
    %74 = arith.maximumf %72, %73 : vector<8x64xf32>
    %75 = vector.extract_strided_slice %74 {offsets = [0, 0], sizes = [8, 32], strides = [1, 1]} : vector<8x64xf32> to vector<8x32xf32>
    %76 = arith.index_cast %c2_i32 : i32 to index
    %c0_49 = arith.constant 0 : index
    %c0_50 = arith.constant 0 : index
    %77 = vector.load %arg17[%76, %c0_49, %c0_50] : memref<8x8x32xf32, #tpu.memory_space<vmem>>, vector<1x8x32xf32>
    %78 = vector.shape_cast %77 : vector<1x8x32xf32> to vector<8x32xf32>
    %79 = vector.shape_cast %75 : vector<8x32xf32> to vector<1x8x32xf32>
    tpu.vector_store %arg17[%76, %c0_49, %c0_50], %79 {strides = array<i32>} : memref<8x8x32xf32, #tpu.memory_space<vmem>>, vector<1x8x32xf32>,
    %80 = vector.extract_strided_slice %74 {offsets = [0, 32], sizes = [8, 32], strides = [1, 1]} : vector<8x64xf32> to vector<8x32xf32>
    %c7_i32_51 = arith.constant 7 : i32
    %81 = arith.subi %c7_i32_51, %c2_i32 : i32
    %82 = arith.index_cast %81 : i32 to index
    %c0_52 = arith.constant 0 : index
    %c0_53 = arith.constant 0 : index
    %83 = vector.load %arg18[%82, %c0_52, %c0_53] : memref<8x8x32xf32, #tpu.memory_space<vmem>>, vector<1x8x32xf32>
    %84 = vector.shape_cast %83 : vector<1x8x32xf32> to vector<8x32xf32>
    %85 = vector.shape_cast %80 : vector<8x32xf32> to vector<1x8x32xf32>
    tpu.vector_store %arg18[%82, %c0_52, %c0_53], %85 {strides = array<i32>} : memref<8x8x32xf32, #tpu.memory_space<vmem>>, vector<1x8x32xf32>,
    %c3_i32 = arith.constant 3 : i32
    %86 = arith.index_cast %c3_i32 : i32 to index
    %c0_54 = arith.constant 0 : index
    %c0_55 = arith.constant 0 : index
    %87 = vector.load %arg17[%86, %c0_54, %c0_55] : memref<8x8x32xf32, #tpu.memory_space<vmem>>, vector<1x8x32xf32>
    %88 = vector.shape_cast %87 : vector<1x8x32xf32> to vector<8x32xf32>
    %c7_i32_56 = arith.constant 7 : i32
    %89 = arith.subi %c7_i32_56, %c3_i32 : i32
    %90 = arith.index_cast %89 : i32 to index
    %c0_57 = arith.constant 0 : index
    %c0_58 = arith.constant 0 : index
    %91 = vector.load %arg18[%90, %c0_57, %c0_58] : memref<8x8x32xf32, #tpu.memory_space<vmem>>, vector<1x8x32xf32>
    %92 = vector.shape_cast %91 : vector<1x8x32xf32> to vector<8x32xf32>
    %93 = tpu.concatenate %88, %92 in 1 : vector<8x32xf32>, vector<8x32xf32> -> vector<8x64xf32>
    %cst_59 = arith.constant dense<0.000000e+00> : vector<8x64xf32>
    %94 = tpu.matmul %74, %15, %cst_59 {dimension_numbers = #tpu.dot_dimension_numbers<[1], [0], [0], [1], [0, 0, 1, 1], [], []>} : vector<8x64xf32>, vector<64x64xf32>, vector<8x64xf32> -> vector<8x64xf32>
    %95 = arith.addf %93, %94 : vector<8x64xf32>
    %cst_60 = arith.constant 0.000000e+00 : f32
    %96 = vector.broadcast %cst_60 : f32 to vector<8x64xf32>
    %97 = arith.maximumf %95, %96 : vector<8x64xf32>
    %98 = vector.extract_strided_slice %97 {offsets = [0, 0], sizes = [8, 32], strides = [1, 1]} : vector<8x64xf32> to vector<8x32xf32>
    %99 = arith.index_cast %c3_i32 : i32 to index
    %c0_61 = arith.constant 0 : index
    %c0_62 = arith.constant 0 : index
    %100 = vector.load %arg17[%99, %c0_61, %c0_62] : memref<8x8x32xf32, #tpu.memory_space<vmem>>, vector<1x8x32xf32>
    %101 = vector.shape_cast %100 : vector<1x8x32xf32> to vector<8x32xf32>
    %102 = vector.shape_cast %98 : vector<8x32xf32> to vector<1x8x32xf32>
    tpu.vector_store %arg17[%99, %c0_61, %c0_62], %102 {strides = array<i32>} : memref<8x8x32xf32, #tpu.memory_space<vmem>>, vector<1x8x32xf32>,
    %103 = vector.extract_strided_slice %97 {offsets = [0, 32], sizes = [8, 32], strides = [1, 1]} : vector<8x64xf32> to vector<8x32xf32>
    %c7_i32_63 = arith.constant 7 : i32
    %104 = arith.subi %c7_i32_63, %c3_i32 : i32
    %105 = arith.index_cast %104 : i32 to index
    %c0_64 = arith.constant 0 : index
    %c0_65 = arith.constant 0 : index
    %106 = vector.load %arg18[%105, %c0_64, %c0_65] : memref<8x8x32xf32, #tpu.memory_space<vmem>>, vector<1x8x32xf32>
    %107 = vector.shape_cast %106 : vector<1x8x32xf32> to vector<8x32xf32>
    %108 = vector.shape_cast %103 : vector<8x32xf32> to vector<1x8x32xf32>
    tpu.vector_store %arg18[%105, %c0_64, %c0_65], %108 {strides = array<i32>} : memref<8x8x32xf32, #tpu.memory_space<vmem>>, vector<1x8x32xf32>,
    %c4_i32 = arith.constant 4 : i32
    %109 = arith.index_cast %c4_i32 : i32 to index
    %c0_66 = arith.constant 0 : index
    %c0_67 = arith.constant 0 : index
    %110 = vector.load %arg17[%109, %c0_66, %c0_67] : memref<8x8x32xf32, #tpu.memory_space<vmem>>, vector<1x8x32xf32>
    %111 = vector.shape_cast %110 : vector<1x8x32xf32> to vector<8x32xf32>
    %c7_i32_68 = arith.constant 7 : i32
    %112 = arith.subi %c7_i32_68, %c4_i32 : i32
    %113 = arith.index_cast %112 : i32 to index
    %c0_69 = arith.constant 0 : index
    %c0_70 = arith.constant 0 : index
    %114 = vector.load %arg18[%113, %c0_69, %c0_70] : memref<8x8x32xf32, #tpu.memory_space<vmem>>, vector<1x8x32xf32>
    %115 = vector.shape_cast %114 : vector<1x8x32xf32> to vector<8x32xf32>
    %116 = tpu.concatenate %111, %115 in 1 : vector<8x32xf32>, vector<8x32xf32> -> vector<8x64xf32>
    %cst_71 = arith.constant dense<0.000000e+00> : vector<8x64xf32>
    %117 = tpu.matmul %97, %15, %cst_71 {dimension_numbers = #tpu.dot_dimension_numbers<[1], [0], [0], [1], [0, 0, 1, 1], [], []>} : vector<8x64xf32>, vector<64x64xf32>, vector<8x64xf32> -> vector<8x64xf32>
    %118 = arith.addf %116, %117 : vector<8x64xf32>
    %cst_72 = arith.constant 0.000000e+00 : f32
    %119 = vector.broadcast %cst_72 : f32 to vector<8x64xf32>
    %120 = arith.maximumf %118, %119 : vector<8x64xf32>
    %121 = vector.extract_strided_slice %120 {offsets = [0, 0], sizes = [8, 32], strides = [1, 1]} : vector<8x64xf32> to vector<8x32xf32>
    %122 = arith.index_cast %c4_i32 : i32 to index
    %c0_73 = arith.constant 0 : index
    %c0_74 = arith.constant 0 : index
    %123 = vector.load %arg17[%122, %c0_73, %c0_74] : memref<8x8x32xf32, #tpu.memory_space<vmem>>, vector<1x8x32xf32>
    %124 = vector.shape_cast %123 : vector<1x8x32xf32> to vector<8x32xf32>
    %125 = vector.shape_cast %121 : vector<8x32xf32> to vector<1x8x32xf32>
    tpu.vector_store %arg17[%122, %c0_73, %c0_74], %125 {strides = array<i32>} : memref<8x8x32xf32, #tpu.memory_space<vmem>>, vector<1x8x32xf32>,
    %126 = vector.extract_strided_slice %120 {offsets = [0, 32], sizes = [8, 32], strides = [1, 1]} : vector<8x64xf32> to vector<8x32xf32>
    %c7_i32_75 = arith.constant 7 : i32
    %127 = arith.subi %c7_i32_75, %c4_i32 : i32
    %128 = arith.index_cast %127 : i32 to index
    %c0_76 = arith.constant 0 : index
    %c0_77 = arith.constant 0 : index
    %129 = vector.load %arg18[%128, %c0_76, %c0_77] : memref<8x8x32xf32, #tpu.memory_space<vmem>>, vector<1x8x32xf32>
    %130 = vector.shape_cast %129 : vector<1x8x32xf32> to vector<8x32xf32>
    %131 = vector.shape_cast %126 : vector<8x32xf32> to vector<1x8x32xf32>
    tpu.vector_store %arg18[%128, %c0_76, %c0_77], %131 {strides = array<i32>} : memref<8x8x32xf32, #tpu.memory_space<vmem>>, vector<1x8x32xf32>,
    %c5_i32 = arith.constant 5 : i32
    %132 = arith.index_cast %c5_i32 : i32 to index
    %c0_78 = arith.constant 0 : index
    %c0_79 = arith.constant 0 : index
    %133 = vector.load %arg17[%132, %c0_78, %c0_79] : memref<8x8x32xf32, #tpu.memory_space<vmem>>, vector<1x8x32xf32>
    %134 = vector.shape_cast %133 : vector<1x8x32xf32> to vector<8x32xf32>
    %c7_i32_80 = arith.constant 7 : i32
    %135 = arith.subi %c7_i32_80, %c5_i32 : i32
    %136 = arith.index_cast %135 : i32 to index
    %c0_81 = arith.constant 0 : index
    %c0_82 = arith.constant 0 : index
    %137 = vector.load %arg18[%136, %c0_81, %c0_82] : memref<8x8x32xf32, #tpu.memory_space<vmem>>, vector<1x8x32xf32>
    %138 = vector.shape_cast %137 : vector<1x8x32xf32> to vector<8x32xf32>
    %139 = tpu.concatenate %134, %138 in 1 : vector<8x32xf32>, vector<8x32xf32> -> vector<8x64xf32>
    %cst_83 = arith.constant dense<0.000000e+00> : vector<8x64xf32>
    %140 = tpu.matmul %120, %15, %cst_83 {dimension_numbers = #tpu.dot_dimension_numbers<[1], [0], [0], [1], [0, 0, 1, 1], [], []>} : vector<8x64xf32>, vector<64x64xf32>, vector<8x64xf32> -> vector<8x64xf32>
    %141 = arith.addf %139, %140 : vector<8x64xf32>
    %cst_84 = arith.constant 0.000000e+00 : f32
    %142 = vector.broadcast %cst_84 : f32 to vector<8x64xf32>
    %143 = arith.maximumf %141, %142 : vector<8x64xf32>
    %144 = vector.extract_strided_slice %143 {offsets = [0, 0], sizes = [8, 32], strides = [1, 1]} : vector<8x64xf32> to vector<8x32xf32>
    %145 = arith.index_cast %c5_i32 : i32 to index
    %c0_85 = arith.constant 0 : index
    %c0_86 = arith.constant 0 : index
    %146 = vector.load %arg17[%145, %c0_85, %c0_86] : memref<8x8x32xf32, #tpu.memory_space<vmem>>, vector<1x8x32xf32>
    %147 = vector.shape_cast %146 : vector<1x8x32xf32> to vector<8x32xf32>
    %148 = vector.shape_cast %144 : vector<8x32xf32> to vector<1x8x32xf32>
    tpu.vector_store %arg17[%145, %c0_85, %c0_86], %148 {strides = array<i32>} : memref<8x8x32xf32, #tpu.memory_space<vmem>>, vector<1x8x32xf32>,
    %149 = vector.extract_strided_slice %143 {offsets = [0, 32], sizes = [8, 32], strides = [1, 1]} : vector<8x64xf32> to vector<8x32xf32>
    %c7_i32_87 = arith.constant 7 : i32
    %150 = arith.subi %c7_i32_87, %c5_i32 : i32
    %151 = arith.index_cast %150 : i32 to index
    %c0_88 = arith.constant 0 : index
    %c0_89 = arith.constant 0 : index
    %152 = vector.load %arg18[%151, %c0_88, %c0_89] : memref<8x8x32xf32, #tpu.memory_space<vmem>>, vector<1x8x32xf32>
    %153 = vector.shape_cast %152 : vector<1x8x32xf32> to vector<8x32xf32>
    %154 = vector.shape_cast %149 : vector<8x32xf32> to vector<1x8x32xf32>
    tpu.vector_store %arg18[%151, %c0_88, %c0_89], %154 {strides = array<i32>} : memref<8x8x32xf32, #tpu.memory_space<vmem>>, vector<1x8x32xf32>,
    %c6_i32 = arith.constant 6 : i32
    %155 = arith.index_cast %c6_i32 : i32 to index
    %c0_90 = arith.constant 0 : index
    %c0_91 = arith.constant 0 : index
    %156 = vector.load %arg17[%155, %c0_90, %c0_91] : memref<8x8x32xf32, #tpu.memory_space<vmem>>, vector<1x8x32xf32>
    %157 = vector.shape_cast %156 : vector<1x8x32xf32> to vector<8x32xf32>
    %c7_i32_92 = arith.constant 7 : i32
    %158 = arith.subi %c7_i32_92, %c6_i32 : i32
    %159 = arith.index_cast %158 : i32 to index
    %c0_93 = arith.constant 0 : index
    %c0_94 = arith.constant 0 : index
    %160 = vector.load %arg18[%159, %c0_93, %c0_94] : memref<8x8x32xf32, #tpu.memory_space<vmem>>, vector<1x8x32xf32>
    %161 = vector.shape_cast %160 : vector<1x8x32xf32> to vector<8x32xf32>
    %162 = tpu.concatenate %157, %161 in 1 : vector<8x32xf32>, vector<8x32xf32> -> vector<8x64xf32>
    %cst_95 = arith.constant dense<0.000000e+00> : vector<8x64xf32>
    %163 = tpu.matmul %143, %15, %cst_95 {dimension_numbers = #tpu.dot_dimension_numbers<[1], [0], [0], [1], [0, 0, 1, 1], [], []>} : vector<8x64xf32>, vector<64x64xf32>, vector<8x64xf32> -> vector<8x64xf32>
    %164 = arith.addf %162, %163 : vector<8x64xf32>
    %cst_96 = arith.constant 0.000000e+00 : f32
    %165 = vector.broadcast %cst_96 : f32 to vector<8x64xf32>
    %166 = arith.maximumf %164, %165 : vector<8x64xf32>
    %167 = vector.extract_strided_slice %166 {offsets = [0, 0], sizes = [8, 32], strides = [1, 1]} : vector<8x64xf32> to vector<8x32xf32>
    %168 = arith.index_cast %c6_i32 : i32 to index
    %c0_97 = arith.constant 0 : index
    %c0_98 = arith.constant 0 : index
    %169 = vector.load %arg17[%168, %c0_97, %c0_98] : memref<8x8x32xf32, #tpu.memory_space<vmem>>, vector<1x8x32xf32>
    %170 = vector.shape_cast %169 : vector<1x8x32xf32> to vector<8x32xf32>
    %171 = vector.shape_cast %167 : vector<8x32xf32> to vector<1x8x32xf32>
    tpu.vector_store %arg17[%168, %c0_97, %c0_98], %171 {strides = array<i32>} : memref<8x8x32xf32, #tpu.memory_space<vmem>>, vector<1x8x32xf32>,
    %172 = vector.extract_strided_slice %166 {offsets = [0, 32], sizes = [8, 32], strides = [1, 1]} : vector<8x64xf32> to vector<8x32xf32>
    %c7_i32_99 = arith.constant 7 : i32
    %173 = arith.subi %c7_i32_99, %c6_i32 : i32
    %174 = arith.index_cast %173 : i32 to index
    %c0_100 = arith.constant 0 : index
    %c0_101 = arith.constant 0 : index
    %175 = vector.load %arg18[%174, %c0_100, %c0_101] : memref<8x8x32xf32, #tpu.memory_space<vmem>>, vector<1x8x32xf32>
    %176 = vector.shape_cast %175 : vector<1x8x32xf32> to vector<8x32xf32>
    %177 = vector.shape_cast %172 : vector<8x32xf32> to vector<1x8x32xf32>
    tpu.vector_store %arg18[%174, %c0_100, %c0_101], %177 {strides = array<i32>} : memref<8x8x32xf32, #tpu.memory_space<vmem>>, vector<1x8x32xf32>,
    %c7_i32_102 = arith.constant 7 : i32
    %178 = arith.index_cast %c7_i32_102 : i32 to index
    %c0_103 = arith.constant 0 : index
    %c0_104 = arith.constant 0 : index
    %179 = vector.load %arg17[%178, %c0_103, %c0_104] : memref<8x8x32xf32, #tpu.memory_space<vmem>>, vector<1x8x32xf32>
    %180 = vector.shape_cast %179 : vector<1x8x32xf32> to vector<8x32xf32>
    %c7_i32_105 = arith.constant 7 : i32
    %181 = arith.subi %c7_i32_105, %c7_i32_102 : i32
    %182 = arith.index_cast %181 : i32 to index
    %c0_106 = arith.constant 0 : index
    %c0_107 = arith.constant 0 : index
    %183 = vector.load %arg18[%182, %c0_106, %c0_107] : memref<8x8x32xf32, #tpu.memory_space<vmem>>, vector<1x8x32xf32>
    %184 = vector.shape_cast %183 : vector<1x8x32xf32> to vector<8x32xf32>
    %185 = tpu.concatenate %180, %184 in 1 : vector<8x32xf32>, vector<8x32xf32> -> vector<8x64xf32>
    %cst_108 = arith.constant dense<0.000000e+00> : vector<8x64xf32>
    %186 = tpu.matmul %166, %15, %cst_108 {dimension_numbers = #tpu.dot_dimension_numbers<[1], [0], [0], [1], [0, 0, 1, 1], [], []>} : vector<8x64xf32>, vector<64x64xf32>, vector<8x64xf32> -> vector<8x64xf32>
    %187 = arith.addf %185, %186 : vector<8x64xf32>
    %cst_109 = arith.constant 0.000000e+00 : f32
    %188 = vector.broadcast %cst_109 : f32 to vector<8x64xf32>
    %189 = arith.maximumf %187, %188 : vector<8x64xf32>
    %190 = vector.extract_strided_slice %189 {offsets = [0, 0], sizes = [8, 32], strides = [1, 1]} : vector<8x64xf32> to vector<8x32xf32>
    %191 = arith.index_cast %c7_i32_102 : i32 to index
    %c0_110 = arith.constant 0 : index
    %c0_111 = arith.constant 0 : index
    %192 = vector.load %arg17[%191, %c0_110, %c0_111] : memref<8x8x32xf32, #tpu.memory_space<vmem>>, vector<1x8x32xf32>
    %193 = vector.shape_cast %192 : vector<1x8x32xf32> to vector<8x32xf32>
    %194 = vector.shape_cast %190 : vector<8x32xf32> to vector<1x8x32xf32>
    tpu.vector_store %arg17[%191, %c0_110, %c0_111], %194 {strides = array<i32>} : memref<8x8x32xf32, #tpu.memory_space<vmem>>, vector<1x8x32xf32>,
    %195 = vector.extract_strided_slice %189 {offsets = [0, 32], sizes = [8, 32], strides = [1, 1]} : vector<8x64xf32> to vector<8x32xf32>
    %c7_i32_112 = arith.constant 7 : i32
    %196 = arith.subi %c7_i32_112, %c7_i32_102 : i32
    %197 = arith.index_cast %196 : i32 to index
    %c0_113 = arith.constant 0 : index
    %c0_114 = arith.constant 0 : index
    %198 = vector.load %arg18[%197, %c0_113, %c0_114] : memref<8x8x32xf32, #tpu.memory_space<vmem>>, vector<1x8x32xf32>
    %199 = vector.shape_cast %198 : vector<1x8x32xf32> to vector<8x32xf32>
    %200 = vector.shape_cast %195 : vector<8x32xf32> to vector<1x8x32xf32>
    tpu.vector_store %arg18[%197, %c0_113, %c0_114], %200 {strides = array<i32>} : memref<8x8x32xf32, #tpu.memory_space<vmem>>, vector<1x8x32xf32>,
    %c8_i32 = arith.constant 8 : i32
    %201 = vector.extract_strided_slice %189 {offsets = [0, 0], sizes = [8, 32], strides = [1, 1]} : vector<8x64xf32> to vector<8x32xf32>
    %c7 = arith.constant 7 : index
    %c0_115 = arith.constant 0 : index
    %c0_116 = arith.constant 0 : index
    %202 = vector.load %arg18[%c7, %c0_115, %c0_116] : memref<8x8x32xf32, #tpu.memory_space<vmem>>, vector<1x8x32xf32>
    %203 = vector.shape_cast %202 : vector<1x8x32xf32> to vector<8x32xf32>
    %c0_117 = arith.constant 0 : index
    %c0_118 = arith.constant 0 : index
    %c0_119 = arith.constant 0 : index
    %204 = vector.load %arg17[%c0_117, %c0_118, %c0_119] : memref<8x8x32xf32, #tpu.memory_space<vmem>>, vector<8x8x32xf32>
    %205 = vector.shape_cast %204 : vector<8x8x32xf32> to vector<64x32xf32>
    %c0_120 = arith.constant 0 : index
    %c0_121 = arith.constant 0 : index
    %c0_122 = arith.constant 0 : index
    %206 = vector.load %arg18[%c0_120, %c0_121, %c0_122] : memref<8x8x32xf32, #tpu.memory_space<vmem>>, vector<8x8x32xf32>
    %207 = vector.shape_cast %206 : vector<8x8x32xf32> to vector<64x32xf32>
    %c0_123 = arith.constant 0 : index
    %c0_124 = arith.constant 0 : index
    %208 = vector.load %arg6[%c0_123, %c0_124] : memref<32x32xf32, #tpu.memory_space<vmem>>, vector<32x32xf32>
    %cst_125 = arith.constant dense<0.000000e+00> : vector<64x32xf32>
    %209 = tpu.matmul %205, %208, %cst_125 {dimension_numbers = #tpu.dot_dimension_numbers<[1], [0], [0], [1], [0, 0, 1, 1], [], []>} : vector<64x32xf32>, vector<32x32xf32>, vector<64x32xf32> -> vector<64x32xf32>
    %c0_126 = arith.constant 0 : index
    %c0_127 = arith.constant 0 : index
    %210 = vector.load %arg8[%c0_126, %c0_127] : memref<1x32xf32, #tpu.memory_space<vmem>>, vector<1x32xf32>
    %211 = vector.broadcast %210 : vector<1x32xf32> to vector<64x32xf32>
    %212 = arith.addf %209, %211 : vector<64x32xf32>
    %213 = vector.shape_cast %212 : vector<64x32xf32> to vector<8x8x32xf32>
    %c0_128 = arith.constant 0 : index
    %c0_129 = arith.constant 0 : index
    %c0_130 = arith.constant 0 : index
    %214 = vector.load %arg17[%c0_128, %c0_129, %c0_130] : memref<8x8x32xf32, #tpu.memory_space<vmem>>, vector<8x8x32xf32>
    tpu.vector_store %arg17[%c0_128, %c0_129, %c0_130], %213 {strides = array<i32>} : memref<8x8x32xf32, #tpu.memory_space<vmem>>, vector<8x8x32xf32>,
    %c0_131 = arith.constant 0 : index
    %c0_132 = arith.constant 0 : index
    %c0_133 = arith.constant 0 : index
    %215 = vector.load %arg17[%c0_131, %c0_132, %c0_133] : memref<8x8x32xf32, #tpu.memory_space<vmem>>, vector<8x8x32xf32>
    %c0_134 = arith.constant 0 : index
    %c0_135 = arith.constant 0 : index
    %216 = vector.load %arg7[%c0_134, %c0_135] : memref<32x32xf32, #tpu.memory_space<vmem>>, vector<32x32xf32>
    %cst_136 = arith.constant dense<0.000000e+00> : vector<64x32xf32>
    %217 = tpu.matmul %207, %216, %cst_136 {dimension_numbers = #tpu.dot_dimension_numbers<[1], [0], [0], [1], [0, 0, 1, 1], [], []>} : vector<64x32xf32>, vector<32x32xf32>, vector<64x32xf32> -> vector<64x32xf32>
    %218 = vector.shape_cast %217 : vector<64x32xf32> to vector<8x8x32xf32>
    %219 = arith.addf %215, %218 : vector<8x8x32xf32>
    %c0_137 = arith.constant 0 : index
    %c0_138 = arith.constant 0 : index
    %c0_139 = arith.constant 0 : index
    %220 = vector.load %arg17[%c0_137, %c0_138, %c0_139] : memref<8x8x32xf32, #tpu.memory_space<vmem>>, vector<8x8x32xf32>
    tpu.vector_store %arg17[%c0_137, %c0_138, %c0_139], %219 {strides = array<i32>} : memref<8x8x32xf32, #tpu.memory_space<vmem>>, vector<8x8x32xf32>,
    %c0_140 = arith.constant 0 : index
    %c0_141 = arith.constant 0 : index
    %221 = vector.load %arg9[%c0_140, %c0_141] : memref<32x32xf32, #tpu.memory_space<vmem>>, vector<32x32xf32>
    %cst_142 = arith.constant 0.000000e+00 : f32
    %222 = vector.broadcast %cst_142 : f32 to vector<8x32xf32>
    %c0_i32_143 = arith.constant 0 : i32
    %223 = arith.index_cast %c0_i32_143 : i32 to index
    %c0_144 = arith.constant 0 : index
    %c0_145 = arith.constant 0 : index
    %224 = vector.load %arg17[%223, %c0_144, %c0_145] : memref<8x8x32xf32, #tpu.memory_space<vmem>>, vector<1x8x32xf32>
    %225 = vector.shape_cast %224 : vector<1x8x32xf32> to vector<8x32xf32>
    %cst_146 = arith.constant dense<0.000000e+00> : vector<8x32xf32>
    %226 = tpu.matmul %222, %221, %cst_146 {dimension_numbers = #tpu.dot_dimension_numbers<[1], [0], [0], [1], [0, 0, 1, 1], [], []>} : vector<8x32xf32>, vector<32x32xf32>, vector<8x32xf32> -> vector<8x32xf32>
    %227 = arith.addf %225, %226 : vector<8x32xf32>
    %cst_147 = arith.constant 0.000000e+00 : f32
    %228 = vector.broadcast %cst_147 : f32 to vector<8x32xf32>
    %229 = arith.maximumf %227, %228 : vector<8x32xf32>
    %c1_i32_148 = arith.constant 1 : i32
    %230 = arith.index_cast %c1_i32_148 : i32 to index
    %c0_149 = arith.constant 0 : index
    %c0_150 = arith.constant 0 : index
    %231 = vector.load %arg17[%230, %c0_149, %c0_150] : memref<8x8x32xf32, #tpu.memory_space<vmem>>, vector<1x8x32xf32>
    %232 = vector.shape_cast %231 : vector<1x8x32xf32> to vector<8x32xf32>
    %cst_151 = arith.constant dense<0.000000e+00> : vector<8x32xf32>
    %233 = tpu.matmul %229, %221, %cst_151 {dimension_numbers = #tpu.dot_dimension_numbers<[1], [0], [0], [1], [0, 0, 1, 1], [], []>} : vector<8x32xf32>, vector<32x32xf32>, vector<8x32xf32> -> vector<8x32xf32>
    %234 = arith.addf %232, %233 : vector<8x32xf32>
    %cst_152 = arith.constant 0.000000e+00 : f32
    %235 = vector.broadcast %cst_152 : f32 to vector<8x32xf32>
    %236 = arith.maximumf %234, %235 : vector<8x32xf32>
    %c2_i32_153 = arith.constant 2 : i32
    %237 = arith.index_cast %c2_i32_153 : i32 to index
    %c0_154 = arith.constant 0 : index
    %c0_155 = arith.constant 0 : index
    %238 = vector.load %arg17[%237, %c0_154, %c0_155] : memref<8x8x32xf32, #tpu.memory_space<vmem>>, vector<1x8x32xf32>
    %239 = vector.shape_cast %238 : vector<1x8x32xf32> to vector<8x32xf32>
    %cst_156 = arith.constant dense<0.000000e+00> : vector<8x32xf32>
    %240 = tpu.matmul %236, %221, %cst_156 {dimension_numbers = #tpu.dot_dimension_numbers<[1], [0], [0], [1], [0, 0, 1, 1], [], []>} : vector<8x32xf32>, vector<32x32xf32>, vector<8x32xf32> -> vector<8x32xf32>
    %241 = arith.addf %239, %240 : vector<8x32xf32>
    %cst_157 = arith.constant 0.000000e+00 : f32
    %242 = vector.broadcast %cst_157 : f32 to vector<8x32xf32>
    %243 = arith.maximumf %241, %242 : vector<8x32xf32>
    %c3_i32_158 = arith.constant 3 : i32
    %244 = arith.index_cast %c3_i32_158 : i32 to index
    %c0_159 = arith.constant 0 : index
    %c0_160 = arith.constant 0 : index
    %245 = vector.load %arg17[%244, %c0_159, %c0_160] : memref<8x8x32xf32, #tpu.memory_space<vmem>>, vector<1x8x32xf32>
    %246 = vector.shape_cast %245 : vector<1x8x32xf32> to vector<8x32xf32>
    %cst_161 = arith.constant dense<0.000000e+00> : vector<8x32xf32>
    %247 = tpu.matmul %243, %221, %cst_161 {dimension_numbers = #tpu.dot_dimension_numbers<[1], [0], [0], [1], [0, 0, 1, 1], [], []>} : vector<8x32xf32>, vector<32x32xf32>, vector<8x32xf32> -> vector<8x32xf32>
    %248 = arith.addf %246, %247 : vector<8x32xf32>
    %cst_162 = arith.constant 0.000000e+00 : f32
    %249 = vector.broadcast %cst_162 : f32 to vector<8x32xf32>
    %250 = arith.maximumf %248, %249 : vector<8x32xf32>
    %c4_i32_163 = arith.constant 4 : i32
    %251 = arith.index_cast %c4_i32_163 : i32 to index
    %c0_164 = arith.constant 0 : index
    %c0_165 = arith.constant 0 : index
    %252 = vector.load %arg17[%251, %c0_164, %c0_165] : memref<8x8x32xf32, #tpu.memory_space<vmem>>, vector<1x8x32xf32>
    %253 = vector.shape_cast %252 : vector<1x8x32xf32> to vector<8x32xf32>
    %cst_166 = arith.constant dense<0.000000e+00> : vector<8x32xf32>
    %254 = tpu.matmul %250, %221, %cst_166 {dimension_numbers = #tpu.dot_dimension_numbers<[1], [0], [0], [1], [0, 0, 1, 1], [], []>} : vector<8x32xf32>, vector<32x32xf32>, vector<8x32xf32> -> vector<8x32xf32>
    %255 = arith.addf %253, %254 : vector<8x32xf32>
    %cst_167 = arith.constant 0.000000e+00 : f32
    %256 = vector.broadcast %cst_167 : f32 to vector<8x32xf32>
    %257 = arith.maximumf %255, %256 : vector<8x32xf32>
    %c5_i32_168 = arith.constant 5 : i32
    %258 = arith.index_cast %c5_i32_168 : i32 to index
    %c0_169 = arith.constant 0 : index
    %c0_170 = arith.constant 0 : index
    %259 = vector.load %arg17[%258, %c0_169, %c0_170] : memref<8x8x32xf32, #tpu.memory_space<vmem>>, vector<1x8x32xf32>
    %260 = vector.shape_cast %259 : vector<1x8x32xf32> to vector<8x32xf32>
    %cst_171 = arith.constant dense<0.000000e+00> : vector<8x32xf32>
    %261 = tpu.matmul %257, %221, %cst_171 {dimension_numbers = #tpu.dot_dimension_numbers<[1], [0], [0], [1], [0, 0, 1, 1], [], []>} : vector<8x32xf32>, vector<32x32xf32>, vector<8x32xf32> -> vector<8x32xf32>
    %262 = arith.addf %260, %261 : vector<8x32xf32>
    %cst_172 = arith.constant 0.000000e+00 : f32
    %263 = vector.broadcast %cst_172 : f32 to vector<8x32xf32>
    %264 = arith.maximumf %262, %263 : vector<8x32xf32>
    %c6_i32_173 = arith.constant 6 : i32
    %265 = arith.index_cast %c6_i32_173 : i32 to index
    %c0_174 = arith.constant 0 : index
    %c0_175 = arith.constant 0 : index
    %266 = vector.load %arg17[%265, %c0_174, %c0_175] : memref<8x8x32xf32, #tpu.memory_space<vmem>>, vector<1x8x32xf32>
    %267 = vector.shape_cast %266 : vector<1x8x32xf32> to vector<8x32xf32>
    %cst_176 = arith.constant dense<0.000000e+00> : vector<8x32xf32>
    %268 = tpu.matmul %264, %221, %cst_176 {dimension_numbers = #tpu.dot_dimension_numbers<[1], [0], [0], [1], [0, 0, 1, 1], [], []>} : vector<8x32xf32>, vector<32x32xf32>, vector<8x32xf32> -> vector<8x32xf32>
    %269 = arith.addf %267, %268 : vector<8x32xf32>
    %cst_177 = arith.constant 0.000000e+00 : f32
    %270 = vector.broadcast %cst_177 : f32 to vector<8x32xf32>
    %271 = arith.maximumf %269, %270 : vector<8x32xf32>
    %c7_i32_178 = arith.constant 7 : i32
    %272 = arith.index_cast %c7_i32_178 : i32 to index
    %c0_179 = arith.constant 0 : index
    %c0_180 = arith.constant 0 : index
    %273 = vector.load %arg17[%272, %c0_179, %c0_180] : memref<8x8x32xf32, #tpu.memory_space<vmem>>, vector<1x8x32xf32>
    %274 = vector.shape_cast %273 : vector<1x8x32xf32> to vector<8x32xf32>
    %cst_181 = arith.constant dense<0.000000e+00> : vector<8x32xf32>
    %275 = tpu.matmul %271, %221, %cst_181 {dimension_numbers = #tpu.dot_dimension_numbers<[1], [0], [0], [1], [0, 0, 1, 1], [], []>} : vector<8x32xf32>, vector<32x32xf32>, vector<8x32xf32> -> vector<8x32xf32>
    %276 = arith.addf %274, %275 : vector<8x32xf32>
    %cst_182 = arith.constant 0.000000e+00 : f32
    %277 = vector.broadcast %cst_182 : f32 to vector<8x32xf32>
    %278 = arith.maximumf %276, %277 : vector<8x32xf32>
    %c8_i32_183 = arith.constant 8 : i32
    %c0_184 = arith.constant 0 : index
    %c0_185 = arith.constant 0 : index
    %279 = vector.load %arg10[%c0_184, %c0_185] : memref<32x32xf32, #tpu.memory_space<vmem>>, vector<32x32xf32>
    %cst_186 = arith.constant dense<0.000000e+00> : vector<8x32xf32>
    %280 = tpu.matmul %201, %279, %cst_186 {dimension_numbers = #tpu.dot_dimension_numbers<[1], [0], [0], [1], [0, 0, 1, 1], [], []>} : vector<8x32xf32>, vector<32x32xf32>, vector<8x32xf32> -> vector<8x32xf32>
    %c0_187 = arith.constant 0 : index
    %c0_188 = arith.constant 0 : index
    %281 = vector.load %arg11[%c0_187, %c0_188] : memref<32x32xf32, #tpu.memory_space<vmem>>, vector<32x32xf32>
    %cst_189 = arith.constant dense<0.000000e+00> : vector<8x32xf32>
    %282 = tpu.matmul %203, %281, %cst_189 {dimension_numbers = #tpu.dot_dimension_numbers<[1], [0], [0], [1], [0, 0, 1, 1], [], []>} : vector<8x32xf32>, vector<32x32xf32>, vector<8x32xf32> -> vector<8x32xf32>
    %283 = arith.addf %280, %282 : vector<8x32xf32>
    %c0_190 = arith.constant 0 : index
    %c0_191 = arith.constant 0 : index
    %284 = vector.load %arg12[%c0_190, %c0_191] : memref<1x32xf32, #tpu.memory_space<vmem>>, vector<1x32xf32>
    %285 = vector.broadcast %284 : vector<1x32xf32> to vector<8x32xf32>
    %286 = arith.addf %283, %285 : vector<8x32xf32>
    %cst_192 = arith.constant 0.000000e+00 : f32
    %287 = vector.broadcast %cst_192 : f32 to vector<8x32xf32>
    %288 = arith.maximumf %286, %287 : vector<8x32xf32>
    %c0_193 = arith.constant 0 : index
    %c0_194 = arith.constant 0 : index
    %289 = vector.load %arg13[%c0_193, %c0_194] : memref<32x32xf32, #tpu.memory_space<vmem>>, vector<32x32xf32>
    %cst_195 = arith.constant dense<0.000000e+00> : vector<8x32xf32>
    %290 = tpu.matmul %278, %289, %cst_195 {dimension_numbers = #tpu.dot_dimension_numbers<[1], [0], [0], [1], [0, 0, 1, 1], [], []>} : vector<8x32xf32>, vector<32x32xf32>, vector<8x32xf32> -> vector<8x32xf32>
    %c0_196 = arith.constant 0 : index
    %c0_197 = arith.constant 0 : index
    %291 = vector.load %arg14[%c0_196, %c0_197] : memref<32x32xf32, #tpu.memory_space<vmem>>, vector<32x32xf32>
    %cst_198 = arith.constant dense<0.000000e+00> : vector<8x32xf32>
    %292 = tpu.matmul %288, %291, %cst_198 {dimension_numbers = #tpu.dot_dimension_numbers<[1], [0], [0], [1], [0, 0, 1, 1], [], []>} : vector<8x32xf32>, vector<32x32xf32>, vector<8x32xf32> -> vector<8x32xf32>
    %293 = arith.addf %290, %292 : vector<8x32xf32>
    %c0_199 = arith.constant 0 : index
    %c0_200 = arith.constant 0 : index
    %294 = vector.load %arg15[%c0_199, %c0_200] : memref<1x32xf32, #tpu.memory_space<vmem>>, vector<1x32xf32>
    %295 = vector.broadcast %294 : vector<1x32xf32> to vector<8x32xf32>
    %296 = arith.addf %293, %295 : vector<8x32xf32>
    %297 = tpu.iota {dimensions = array<i32: 1>} : vector<8x32xi32>
    %c16_i32 = arith.constant 16 : i32
    %298 = vector.broadcast %c16_i32 : i32 to vector<8x32xi32>
    %299 = arith.cmpi slt, %297, %298 : vector<8x32xi32>
    %cst_201 = arith.constant 0.000000e+00 : f32
    %300 = vector.broadcast %cst_201 : f32 to vector<8x32xf32>
    %301 = arith.maximumf %296, %300 : vector<8x32xf32>
    %302 = vector.broadcast %cst_201 : f32 to vector<8x32xf32>
    %303 = arith.subf %296, %302 : vector<8x32xf32>
    %304 = arith.cmpf one, %303, %303 : vector<8x32xf32>
    %305 = vector.broadcast %cst_201 : f32 to vector<8x32xf32>
    %306 = arith.addf %296, %305 : vector<8x32xf32>
    %307 = math.absf %303 : vector<8x32xf32>
    %cst_202 = arith.constant 0.000000e+00 : f32
    %308 = vector.broadcast %cst_202 : f32 to vector<8x32xf32>
    %309 = arith.subf %308, %307 : vector<8x32xf32>
    %310 = math.exp %309 : vector<8x32xf32>
    %311 = math.log1p %310 : vector<8x32xf32>
    %312 = arith.addf %301, %311 : vector<8x32xf32>
    %313 = arith.select %304, %306, %312 : vector<8x32xi1>, vector<8x32xf32>
    %cst_203 = arith.constant 9.99999974E-5 : f32
    %314 = vector.broadcast %cst_203 : f32 to vector<8x32xf32>
    %315 = arith.addf %313, %314 : vector<8x32xf32>
    %316 = arith.select %299, %296, %315 : vector<8x32xi1>, vector<8x32xf32>
    %cst_204 = arith.constant 0.000000e+00 : f32
    %317 = vector.broadcast %cst_204 : f32 to vector<8x32xf32>
    %318 = tpu.concatenate %316, %278, %288, %317 in 1 : vector<8x32xf32>, vector<8x32xf32>, vector<8x32xf32>, vector<8x32xf32> -> vector<8x128xf32>
    %c0_205 = arith.constant 0 : index
    %c0_206 = arith.constant 0 : index
    %319 = vector.load %arg16[%c0_205, %c0_206] : memref<8x128xf32, #tpu.memory_space<vmem>>, vector<8x128xf32>
    tpu.vector_store %arg16[%c0_205, %c0_206], %318 {strides = array<i32>} : memref<8x128xf32, #tpu.memory_space<vmem>>, vector<8x128xf32>,
    return
  }
}

</mosaic_0001>

<bundles_post_ra>
// kernel: tpu_custom_call.1
= control target key start
LH: loop header
LB: loop body
LE: loop exit
PB: predicated region body
PF: predicated region fallthrough
CT: control target
= control target key end

     0   :  { %s4173_s0 = inlined_call_operand.vmem [shape: f32[64,32], index: 0, kind: input, shape index: {}]   ;;  %s4174_s1 = inlined_call_operand.vmem [shape: f32[32,32], index: 1, kind: input, shape index: {}]   ;;  %s4175_s2 = inlined_call_operand.hbm [shape: f32[32,32], index: 2, kind: input, shape index: {}]   ;;  %s4176_s3 = inlined_call_operand.vmem [shape: f32[1,32], index: 3, kind: input, shape index: {}]   ;;  %s4177_s4 = inlined_call_operand.vmem [shape: f32[1,32], index: 4, kind: input, shape index: {}]   ;;  %s4178_s5 = inlined_call_operand.vmem [shape: f32[64,64], index: 5, kind: input, shape index: {}]   ;;  %s4179_s6 = inlined_call_operand.hbm [shape: f32[32,32], index: 6, kind: input, shape index: {}]   ;;  %s4180_s7 = inlined_call_operand.hbm [shape: f32[32,32], index: 7, kind: input, shape index: {}]   ;;  %s4181_s8 = inlined_call_operand.hbm [shape: f32[1,32], index: 8, kind: input, shape index: {}]   ;;  %s4182_s9 = inlined_call_operand.vmem [shape: f32[32,32], index: 9, kind: input, shape index: {}]   ;;  %s4183_s10 = inlined_call_operand.hbm [shape: f32[32,32], index: 10, kind: input, shape index: {}]   ;;  %s4184_s11 = inlined_call_operand.hbm [shape: f32[32,32], index: 11, kind: input, shape index: {}]   ;;  %s4185_s12 = inlined_call_operand.vmem [shape: f32[1,32], index: 12, kind: input, shape index: {}]   ;;  %s4186_s13 = inlined_call_operand.hbm [shape: f32[32,32], index: 13, kind: input, shape index: {}]   ;;  %s4187_s14 = inlined_call_operand.hbm [shape: f32[32,32], index: 14, kind: input, shape index: {}]   ;;  %s4188_s15 = inlined_call_operand.vmem [shape: f32[1,32], index: 15, kind: input, shape index: {}]   ;;  %s4189_s16 = inlined_call_operand.hbm [shape: f32[8,128], index: 16, kind: output, shape index: {}]  }
   0x1   :  { %4191 = sst [smem:[#allocation25_spill]] %s4173_s0 }
   0x2   :  { %21 = vsyncpa [#allocation5], 0 }
   0x3   :  { %22 = vsyncpa [#allocation8], 0 }
   0x4   :  { %23 = vsyncpa [#allocation11], 0 }
   0x5   :  { %24 = vsyncpa [#allocation14], 0 }
   0x6   :  { %25 = vsyncpa [#allocation17], 0 }
   0x7   :  { %26 = vsyncpa [#allocation6], 0  ;;  %s3502_s21 = smov [#allocation7]   ;;  %s3503_s23 = smov [#allocation10]  }
   0x8   :  { %s54_s22 = sshll.u32 %s3502_s21, 4  ;;  %s79_s24 = sshll.u32 %s3503_s23, 4  ;;  %s55_s22 = int_to_ptr.vmem [resolvable:$true] %s54_s22  ;;  %s3604_s24 = int_to_ptr.vmem [resolvable:$true] %s79_s24 }
   0x9   :  { %s3292_s27 = scalar_lea.hbm %s4179_s6, 512 }
   0xa   :  { %p3293_p0 = scmp.ne.s32.totalorder %s4179_s6, %s3292_s27  ;;  %p3296_p1 = scmp.lt.u32.totalorder %s3292_s27, %s4179_s6 }
   0xc   :  { %p3298_p2 = pnand %p3296_p1, %p3293_p0 }
   0xe   :  { %3301 = shalt.err (!%p3298_p2)
}
   0xf   :  { %s3302_s17 = scalar_lea.vmem %s55_s22, 512  ;;  %p3307_p4 = scmp.lt.s32.totalorder %s55_s22, %s55_s22 }
  0x10   :  { %p3303_p3 = scmp.ne.s32.totalorder %s55_s22, %s3302_s17  ;;  %p3308_p5 = scmp.lt.s32.totalorder %s3302_s17, %s3302_s17 }
  0x12   :  { %p3309_p6 = por %p3308_p5, %p3307_p4 }
  0x14   :  { %p3310_p7 = pnand %p3309_p6, %p3303_p3 }
  0x16   :  { %3313 = shalt.err (!%p3310_p7)
}
  0x17   :  { %s3504_s18 = smov 128   ;;  %s3505_s19 = smov 8  }
  0x18   :  { %60 = dma.hbm_to_vmem [thread:$0]  %s4179_s6, 512, %s55_s22, [#allocation8], %s3504_s18, %s3504_s18, %s3505_s19  }
  0x19   :  { %s3314_s26 = scalar_lea.hbm %s4181_s8, 16 }
  0x1a   :  { %p3315_p8 = scmp.ne.s32.totalorder %s4181_s8, %s3314_s26  ;;  %p3318_p9 = scmp.lt.u32.totalorder %s3314_s26, %s4181_s8 }
  0x1c   :  { %p3320_p10 = pnand %p3318_p9, %p3315_p8 }
  0x1e   :  { %3323 = shalt.err (!%p3320_p10)
}
  0x1f   :  { %s3324_s0 = scalar_lea.vmem %s3604_s24, 16  ;;  %s3328_s6 = scalar_lea.vmem %s3604_s24, 32 }
  0x20   :  { %p3325_p11 = scmp.ne.s32.totalorder %s3604_s24, %s3324_s0  ;;  %p3329_p12 = scmp.lt.s32.totalorder %s3604_s24, %s3604_s24 }
  0x21   :  { %p3330_p13 = scmp.lt.s32.totalorder %s3328_s6, %s3324_s0 }
  0x23   :  { %p3331_p0 = por %p3330_p13, %p3329_p12 }
  0x25   :  { %p3332_p1 = pnand %p3331_p0, %p3325_p11 }
  0x27   :  { %3335 = shalt.err (!%p3332_p1)
}
  0x28   :  { %82 = dma.hbm_to_vmem [thread:$0]  %s4181_s8, 16, %s3604_s24, [#allocation11]  }
  0x29   :  { %s3506_s20 = smov [#allocation13]   ;;  %s3507_s23 = smov [#allocation4]  }
  0x2a   :  { %s102_s21 = sshll.u32 %s3506_s20, 4  ;;  %s36_s25 = sshll.u32 %s3507_s23, 4  ;;  %s103_s21 = int_to_ptr.vmem [resolvable:$true] %s102_s21  ;;  %s3639_s25 = int_to_ptr.vmem [resolvable:$true] %s36_s25 }
  0x2b   :  { %s3336_s28 = scalar_lea.hbm %s4184_s11, 512 }
  0x2c   :  { %p3337_p2 = scmp.ne.s32.totalorder %s4184_s11, %s3336_s28  ;;  %p3340_p3 = scmp.lt.u32.totalorder %s3336_s28, %s4184_s11 }
  0x2e   :  { %p3342_p4 = pnand %p3340_p3, %p3337_p2 }
  0x30   :  { %3345 = shalt.err (!%p3342_p4)
}
  0x31   :  { %s3346_s8 = scalar_lea.vmem %s103_s21, 512  ;;  %p3351_p6 = scmp.lt.s32.totalorder %s103_s21, %s103_s21 }
  0x32   :  { %p3347_p5 = scmp.ne.s32.totalorder %s103_s21, %s3346_s8  ;;  %p3352_p7 = scmp.lt.s32.totalorder %s3346_s8, %s3346_s8 }
  0x34   :  { %p3353_p8 = por %p3352_p7, %p3351_p6 }
  0x36   :  { %p3354_p9 = pnand %p3353_p8, %p3347_p5 }
  0x38   :  { %3357 = shalt.err (!%p3354_p9)
}
  0x39   :  { %108 = dma.hbm_to_vmem [thread:$0]  %s4184_s11, 512, %s103_s21, [#allocation14], %s3504_s18, %s3504_s18, %s3505_s19  }
  0x3a   :  { %s3358_s23 = scalar_lea.hbm %s4175_s2, 512 }
  0x3b   :  { %p3359_p10 = scmp.ne.s32.totalorder %s4175_s2, %s3358_s23  ;;  %p3362_p11 = scmp.lt.u32.totalorder %s3358_s23, %s4175_s2 }
  0x3d   :  { %p3364_p12 = pnand %p3362_p11, %p3359_p10 }
  0x3f   :  { %3367 = shalt.err (!%p3364_p12)
}
  0x40   :  { %s3368_s30 = scalar_lea.vmem %s3639_s25, 512  ;;  %p3373_p0 = scmp.lt.s32.totalorder %s3639_s25, %s3639_s25 }
  0x41   :  { %p3369_p13 = scmp.ne.s32.totalorder %s3639_s25, %s3368_s30  ;;  %p3374_p1 = scmp.lt.s32.totalorder %s3368_s30, %s3368_s30 }
  0x43   :  { %p3375_p2 = por %p3374_p1, %p3373_p0 }
  0x45   :  { %p3376_p3 = pnand %p3375_p2, %p3369_p13 }
  0x47   :  { %3379 = shalt.err (!%p3376_p3)
}
  0x48   :  { %42 = dma.hbm_to_vmem [thread:$0]  %s4175_s2, 512, %s3639_s25, [#allocation5], %s3504_s18, %s3504_s18, %s3505_s19  }
  0x49   :  { %s3508_s0 = smov [#allocation9]   ;;  %s3509_s8 = smov [#allocation12]  }
  0x4a   :  { %s66_s6 = sshll.u32 %s3508_s0, 4  ;;  %s90_s24 = sshll.u32 %s3509_s8, 4  ;;  %s67_s6 = int_to_ptr.vmem [resolvable:$true] %s66_s6  ;;  %s3676_s24 = int_to_ptr.vmem [resolvable:$true] %s90_s24 }
  0x4b   :  { %s3380_s20 = scalar_lea.hbm %s4180_s7, 512 }
  0x4c   :  { %p3381_p4 = scmp.ne.s32.totalorder %s4180_s7, %s3380_s20  ;;  %p3384_p5 = scmp.lt.u32.totalorder %s3380_s20, %s4180_s7 }
  0x4e   :  { %p3386_p6 = pnand %p3384_p5, %p3381_p4 }
  0x50   :  { %3389 = shalt.err (!%p3386_p6)
}
  0x51   :  { %s3390_s2 = scalar_lea.vmem %s67_s6, 512  ;;  %p3395_p8 = scmp.lt.s32.totalorder %s67_s6, %s67_s6 }
  0x52   :  { %p3391_p7 = scmp.ne.s32.totalorder %s67_s6, %s3390_s2  ;;  %p3396_p9 = scmp.lt.s32.totalorder %s3390_s2, %s3390_s2 }
  0x54   :  { %p3397_p10 = por %p3396_p9, %p3395_p8 }
  0x56   :  { %p3398_p11 = pnand %p3397_p10, %p3391_p7 }
  0x58   :  { %3401 = shalt.err (!%p3398_p11)
}
  0x59   :  { %72 = dma.hbm_to_vmem [thread:$0]  %s4180_s7, 512, %s67_s6, [#allocation8], %s3504_s18, %s3504_s18, %s3505_s19  }
  0x5a   :  { %s3402_s21 = scalar_lea.hbm %s4183_s10, 512 }
  0x5b   :  { %p3403_p12 = scmp.ne.s32.totalorder %s4183_s10, %s3402_s21  ;;  %p3406_p13 = scmp.lt.u32.totalorder %s3402_s21, %s4183_s10 }
  0x5d   :  { %p3408_p0 = pnand %p3406_p13, %p3403_p12 }
  0x5f   :  { %3411 = shalt.err (!%p3408_p0)
}
  0x60   :  { %s3412_s20 = scalar_lea.vmem %s3676_s24, 512  ;;  %p3417_p2 = scmp.lt.s32.totalorder %s3676_s24, %s3676_s24 }
  0x61   :  { %p3413_p1 = scmp.ne.s32.totalorder %s3676_s24, %s3412_s20  ;;  %p3418_p3 = scmp.lt.s32.totalorder %s3412_s20, %s3412_s20 }
  0x63   :  { %p3419_p4 = por %p3418_p3, %p3417_p2 }
  0x65   :  { %p3420_p5 = pnand %p3419_p4, %p3413_p1 }
  0x67   :  { %3423 = shalt.err (!%p3420_p5)
}
  0x68   :  { %96 = dma.hbm_to_vmem [thread:$0]  %s4183_s10, 512, %s3676_s24, [#allocation11], %s3504_s18, %s3504_s18, %s3505_s19  }
  0x69   :  { %s3510_s23 = smov [#allocation15]   ;;  %s3511_s27 = smov [#allocation16]  }
  0x6a   :  { %s116_s26 = sshll.u32 %s3510_s23, 4  ;;  %s128_s28 = sshll.u32 %s3511_s27, 4  ;;  %s117_s26 = int_to_ptr.vmem [resolvable:$true] %s116_s26  ;;  %s3713_s28 = int_to_ptr.vmem [resolvable:$true] %s128_s28 }
  0x6b   :  { %s3424_s29 = scalar_lea.hbm %s4186_s13, 512 }
  0x6c   :  { %p3425_p6 = scmp.ne.s32.totalorder %s4186_s13, %s3424_s29  ;;  %p3428_p7 = scmp.lt.u32.totalorder %s3424_s29, %s4186_s13 }
  0x6e   :  { %p3430_p8 = pnand %p3428_p7, %p3425_p6 }
  0x70   :  { %3433 = shalt.err (!%p3430_p8)
}
  0x71   :  { %s3434_s10 = scalar_lea.vmem %s117_s26, 512  ;;  %p3439_p10 = scmp.lt.s32.totalorder %s117_s26, %s117_s26 }
  0x72   :  { %p3435_p9 = scmp.ne.s32.totalorder %s117_s26, %s3434_s10  ;;  %p3440_p11 = scmp.lt.s32.totalorder %s3434_s10, %s3434_s10 }
  0x74   :  { %p3441_p12 = por %p3440_p11, %p3439_p10 }
  0x76   :  { %p3442_p13 = pnand %p3441_p12, %p3435_p9 }
  0x78   :  { %3445 = shalt.err (!%p3442_p13)
}
  0x79   :  { %122 = dma.hbm_to_vmem [thread:$0]  %s4186_s13, 512, %s117_s26, [#allocation14], %s3504_s18, %s3504_s18, %s3505_s19  }
  0x7a   :  { %s3446_s20 = scalar_lea.hbm %s4187_s14, 512 }
  0x7b   :  { %p3447_p0 = scmp.ne.s32.totalorder %s4187_s14, %s3446_s20  ;;  %p3450_p1 = scmp.lt.u32.totalorder %s3446_s20, %s4187_s14 }
  0x7d   :  { %p3452_p2 = pnand %p3450_p1, %p3447_p0 }
  0x7f   :  { %3455 = shalt.err (!%p3452_p2)
}
  0x80   :  { %s3456_s2 = scalar_lea.vmem %s3713_s28, 512  ;;  %p3461_p4 = scmp.lt.s32.totalorder %s3713_s28, %s3713_s28 }
  0x81   :  { %p3457_p3 = scmp.ne.s32.totalorder %s3713_s28, %s3456_s2  ;;  %p3462_p5 = scmp.lt.s32.totalorder %s3456_s2, %s3456_s2 }
  0x83   :  { %p3463_p6 = por %p3462_p5, %p3461_p4 }
  0x85   :  { %p3464_p7 = pnand %p3463_p6, %p3457_p3 }
  0x87   :  { %3467 = shalt.err (!%p3464_p7)
}
  0x88   :  { %134 = dma.hbm_to_vmem [thread:$0]  %s4187_s14, 512, %s3713_s28, [#allocation17], %s3504_s18, %s3504_s18, %s3505_s19  }
  0x89   :  { %3490 = dma.done.wait [#allocation5], 512  }
  0x8a   :  { %3491 = vsyncadd [#allocation5], 4294966784 }
  0x8b   :  { %3492 = dma.done.wait [#allocation8], 1024  }
  0x8c   :  { %3493 = vsyncadd [#allocation8], 4294966272 }
  0x8d   :  { %3494 = dma.done.wait [#allocation11], 528  }
  0x8e   :  { %3495 = vsyncadd [#allocation11], 4294966768 }
  0x8f   :  { %3496 = dma.done.wait [#allocation14], 1024  }
  0x90   :  { %3497 = vsyncadd [#allocation14], 4294966272 }
  0x91   :  { %3498 = dma.done.wait [#allocation17], 512  }
  0x92   :  { %3499 = vsyncadd [#allocation17], 4294966784  ;;  %vm180_vm0 = vcmask 261120   ;;  %v318_v0 = vld [vmem:[#allocation4] sm:$0xff]  ;;  %v319_v1 = vld [vmem:[#allocation4 + $0x8] sm:$0xff]  ;;  %s4192_s30 = sld [smem:[#allocation25_spill]] }
  0x93   :  { %v320_v2 = vld [vmem:[#allocation4 + $0x10] sm:$0xff]  ;;  %v3079_v3 = vpack.c.bf16 %v319_v1, %v318_v0  ;;  %v321_v4 = vld [vmem:[#allocation4 + $0x18] sm:$0xff]  ;;  %v169_v7 = vld [vmem:[%s4174_s1] sm:$0xff]  ;;  %v3512_v17 = vmov 0.0|0.0   ;;  %vm3513_vm1 = vmmov 0   ;;  %v3514_v33 = vmov 0.0  }
  0x94   :  { %v3083_v6 = vpack.c.bf16 %v321_v4, %v320_v2  ;;  %v170_v8 = vld [vmem:[%s4174_s1 + $0x8] sm:$0xff]  ;;  %v171_v9 = vld [vmem:[%s4174_s1 + $0x10] sm:$0xff]  ;;  %v172_v11 = vld [vmem:[%s4174_s1 + $0x18] sm:$0xff]  ;;  %vm458_vm2 = vcmask 523264   ;;  %s3517_s28 = smov 64   ;;  %vm2450_vm6 = vcmask 785408  }
  0x95   :  { %3080 = vmatprep.subr.bf16.mxu1 %v3079_v3  ;;  %v3071_v10 = vpack.c.bf16 %v170_v8, %v169_v7  ;;  %v3075_v12 = vpack.c.bf16 %v172_v11, %v171_v9  ;;  %v442_v14 = vld [vmem:[%s4178_s5] sm:$0xff]  ;;  %v443_v15 = vld [vmem:[%s4178_s5 + $0x8] sm:$0xff]  ;;  %v444_v20 = vld [vmem:[%s4178_s5 + $0x10] sm:$0xff] }
  0x96   :  { %3082 = vmatpush3.bf16.msra.mxu1 %v3079_v3  ;;  %v3781_v18 = vpack.c.bf16 %v443_v15, %v442_v14  ;;  %v445_v21 = vld [vmem:[%s4178_s5 + $0x18] sm:$0xff]  ;;  %v446_v25 = vld [vmem:[%s4178_s5 + $0x20] sm:$0xff]  ;;  %v447_v26 = vld [vmem:[%s4178_s5 + $0x28] sm:$0xff] }
  0x97   :  { %3084 = vmatprep.subr.bf16.mxu1 %v3083_v6  ;;  %3072 = vmatprep.subr.bf16.mxu0 %v3071_v10  ;;  %v3801_v23 = vpack.c.bf16 %v445_v21, %v444_v20  ;;  %v3823_v28 = vpack.c.bf16 %v447_v26, %v446_v25  ;;  %v448_v30 = vld [vmem:[%s4178_s5 + $0x30] sm:$0xff]  ;;  %v449_v31 = vld [vmem:[%s4178_s5 + $0x38] sm:$0xff]  ;;  %v2481_v34 = vld [vmem:[%s4177_s4] ss:$0 sm:$0xff]  ;;  %s3516_s4 = smov 96  }
  0x98   :  { %v161_v5 = vld [vmem:[%s4192_s30] sm:$0xff]  ;;  %v162_v13 = vld [vmem:[%s4192_s30 + $0x8] sm:$0xff]  ;;  %3074 = vmatpush3.bf16.msra.mxu0 %v3071_v10  ;;  %v163_v16 = vld [vmem:[%s4192_s30 + $0x10] sm:$0xff]  ;;  %v3842_v32 = vpack.c.bf16 %v449_v31, %v448_v30 }
  0x99   :  { %2735 = vmatprep.mubr.msk.f32.mxu1 %vm180_vm0, %v161_v5  ;;  %2715 = vmatprep.mubr.msk.f32.mxu0 %vm180_vm0, %v161_v5  ;;  %v164_v19 = vld [vmem:[%s4192_s30 + $0x18] sm:$0xff]  ;;  %v165_v22 = vld [vmem:[%s4192_s30 + $0x20] sm:$0xff]  ;;  %v166_v24 = vld [vmem:[%s4192_s30 + $0x28] sm:$0xff] }
  0x9a   :  { %3086 = vmatpush3.bf16.msra.mxu1 %v3083_v6  ;;  %3076 = vmatprep.subr.bf16.mxu0 %v3075_v12  ;;  %v167_v27 = vld [vmem:[%s4192_s30 + $0x30] sm:$0xff]  ;;  %v168_v29 = vld [vmem:[%s4192_s30 + $0x38] sm:$0xff]  ;;  %v2472_v39 = vld [vmem:[%s4176_s3] ss:$0 sm:$0xff]  ;;  %s3515_s3 = smov 32  }
  0x9b   :  { %3099 = vmatprep.subr.bf16.mxu1 %v3512_v17 }
  0x9c   :  { %3078 = vmatpush3.bf16.msra.mxu0 %v3075_v12 }
  0x9d   :  { %2736 = vmatmul.mubr.msk.f32.vlgmr.msra.gmra.mrb[0].mxu1 %vm180_vm0, %v162_v13  ;;  %3087 = vmatprep.subr.bf16.mxu0 %v3512_v17 }
  0x9e   :  { %2738 = vmatprep.mubr.msk.f32.mxu1 %vm180_vm0, %v163_v16  ;;  %3101 = vmatpush3.bf16.msra.mxu1 %v3781_v18 }
  0x9f   :  { %3102 = vmatprep.subr.bf16.mxu1 %v3512_v17  ;;  %2716 = vmatmul.mubr.msk.f32.vlgmr.msra.gmra.mrb[0].mxu0 %vm180_vm0, %v162_v13 }
  0xa0   :  { %2718 = vmatprep.mubr.msk.f32.mxu0 %vm180_vm0, %v163_v16  ;;  %3089 = vmatpush3.bf16.msra.mxu0 %v3781_v18 }
  0xa1   :  { %2739 = vmatmul.mubr.msk.f32.gmra.mrb[2].mxu1 %vm180_vm0, %v164_v19  ;;  %3090 = vmatprep.subr.bf16.mxu0 %v3512_v17 }
  0xa2   :  { %2741 = vmatprep.mubr.msk.f32.mxu1 %vm180_vm0, %v165_v22  ;;  %3104 = vmatpush3.bf16.msra.mxu1 %v3801_v23 }
  0xa3   :  { %3105 = vmatprep.subr.bf16.mxu1 %v3512_v17  ;;  %2719 = vmatmul.mubr.msk.f32.gmra.mrb[2].mxu0 %vm180_vm0, %v164_v19 }
  0xa4   :  { %2721 = vmatprep.mubr.msk.f32.mxu0 %vm180_vm0, %v165_v22  ;;  %3092 = vmatpush3.bf16.msra.mxu0 %v3801_v23 }
  0xa5   :  { %2742 = vmatmul.mubr.msk.f32.gmra.mrb[4].mxu1 %vm180_vm0, %v166_v24  ;;  %3093 = vmatprep.subr.bf16.mxu0 %v3512_v17 }
  0xa6   :  { %2744 = vmatprep.mubr.msk.f32.mxu1 %vm180_vm0, %v167_v27  ;;  %3107 = vmatpush3.bf16.msra.mxu1 %v3823_v28 }
  0xa7   :  { %3108 = vmatprep.subr.bf16.mxu1 %v3512_v17  ;;  %2722 = vmatmul.mubr.msk.f32.gmra.mrb[4].mxu0 %vm180_vm0, %v166_v24 }
  0xa8   :  { %2724 = vmatprep.mubr.msk.f32.mxu0 %vm180_vm0, %v167_v27  ;;  %3095 = vmatpush3.bf16.msra.mxu0 %v3823_v28 }
  0xa9   :  { %2745 = vmatmul.mubr.msk.f32.gmra.mrb[6].mxu1 %vm180_vm0, %v168_v29  ;;  %3096 = vmatprep.subr.bf16.mxu0 %v3512_v17 }
  0xaa   :  { %2782 = vmatprep.mubr.msk.f32.mxu1 %vm3513_vm1, %v3514_v33  ;;  %3110 = vmatpush3.bf16.msra.mxu1 %v3842_v32 }
  0xab   :  { %3123 = vmatprep.subr.bf16.mxu1 %v3512_v17  ;;  %2725 = vmatmul.mubr.msk.f32.gmra.mrb[6].mxu0 %vm180_vm0, %v168_v29 }
  0xac   :  { %2763 = vmatprep.mubr.msk.f32.mxu0 %vm3513_vm1, %v3514_v33  ;;  %3098 = vmatpush3.bf16.msra.mxu0 %v3842_v32 }
  0xad   :  { %3111 = vmatprep.subr.bf16.mxu0 %v3512_v17 }
  0xaf   :  { %2764 = vmatmul.mubr.f32.vlgmr.msra.gmra.mrb[8].mxu0 %v3514_v33 }
  0xb0   :  { %3113 = vmatpush3.bf16.msra.mxu0 %v3781_v18  ;;  %2801 = vmatprep.mubr.msk.f32.mxu0 %vm3513_vm1, %v3514_v33 }
  0xb1   :  { %3114 = vmatprep.subr.bf16.mxu0 %v3512_v17 }
  0xb4   :  { %3116 = vmatpush3.bf16.msra.mxu0 %v3801_v23 }
  0xb5   :  { %3117 = vmatprep.subr.bf16.mxu0 %v3512_v17 }
  0xb8   :  { %3119 = vmatpush3.bf16.msra.mxu0 %v3823_v28 }
  0xb9   :  { %3120 = vmatprep.subr.bf16.mxu0 %v3512_v17 }
  0xbc   :  { %3122 = vmatpush3.bf16.msra.mxu0 %v3842_v32 }
  0xbd   :  { %3135 = vmatprep.subr.bf16.mxu0 %v3512_v17 }
 0x170   :  { %v2737_v35 = vpop.f32.mrb[0].mxu1 }
 0x171   :  { %v401_v36 = vadd.f32 %v2737_v35, %v2481_v34  ;;  %v395_v37 = vpop.f32.mrb[1].mxu1 }
 0x172   :  { %v396_v38 = vadd.f32 %v2481_v34, %v395_v37  ;;  %v2717_v41 = vpop.f32.mrb[0].mxu0 }
 0x173   :  { %435 = vst.msk [vmem:[#allocation3 + $0x8] sm:$0xff] %vm180_vm0, %v401_v36  ;;  %v277_v44 = vadd.f32 %v2717_v41, %v2472_v39  ;;  %v271_v45 = vpop.f32.mrb[1].mxu0 }
 0x174   :  { %434 = vst.msk [vmem:[#allocation3] sm:$0xff] %vm180_vm0, %v396_v38  ;;  %v2740_v40 = vpop.f32.mrb[2].mxu1  ;;  %v272_v47 = vadd.f32 %v2472_v39, %v271_v45 }
 0x175   :  { %v411_v42 = vadd.f32 %v2740_v40, %v2481_v34  ;;  %v405_v43 = vpop.f32.mrb[3].mxu1  ;;  %311 = vst.msk [vmem:[#allocation2 + $0x8] sm:$0xff] %vm180_vm0, %v277_v44 }
 0x176   :  { %v406_v46 = vadd.f32 %v2481_v34, %v405_v43  ;;  %310 = vst.msk [vmem:[#allocation2] sm:$0xff] %vm180_vm0, %v272_v47  ;;  %v2720_v49 = vpop.f32.mrb[2].mxu0 }
 0x177   :  { %437 = vst.msk [vmem:[#allocation3 + $0x18] sm:$0xff] %vm180_vm0, %v411_v42  ;;  %v287_v52 = vadd.f32 %v2720_v49, %v2472_v39  ;;  %v281_v53 = vpop.f32.mrb[3].mxu0 }
 0x178   :  { %436 = vst.msk [vmem:[#allocation3 + $0x10] sm:$0xff] %vm180_vm0, %v406_v46  ;;  %v2743_v48 = vpop.f32.mrb[4].mxu1  ;;  %v282_v55 = vadd.f32 %v2472_v39, %v281_v53  ;;  %v1179_v53 = vld [vmem:[#allocation7] sm:$0xff] }
 0x179   :  { %v421_v50 = vadd.f32 %v2743_v48, %v2481_v34  ;;  %v415_v51 = vpop.f32.mrb[5].mxu1  ;;  %313 = vst.msk [vmem:[#allocation2 + $0x18] sm:$0xff] %vm180_vm0, %v287_v52 }
 0x17a   :  { %v416_v54 = vadd.f32 %v2481_v34, %v415_v51  ;;  %312 = vst.msk [vmem:[#allocation2 + $0x10] sm:$0xff] %vm180_vm0, %v282_v55  ;;  %v2723_v57 = vpop.f32.mrb[4].mxu0  ;;  %v988_v13 = vld [vmem:[#allocation3 + $0x8] sm:$0xff] }
 0x17b   :  { %439 = vst.msk [vmem:[#allocation3 + $0x28] sm:$0xff] %vm180_vm0, %v421_v50  ;;  %v297_v60 = vadd.f32 %v2723_v57, %v2472_v39  ;;  %v291_v61 = vpop.f32.mrb[5].mxu0  ;;  %v1076_v12 = vld [vmem:[#allocation3] sm:$0xff] }
 0x17c   :  { %438 = vst.msk [vmem:[#allocation3 + $0x20] sm:$0xff] %vm180_vm0, %v416_v54  ;;  %v2746_v56 = vpop.f32.mrb[6].mxu1  ;;  %v292_v63 = vadd.f32 %v2472_v39, %v291_v61  ;;  %v541_v22 = vld [vmem:[#allocation2 + $0x8] sm:$0xff] }
 0x17d   :  { %v431_v58 = vadd.f32 %v2746_v56, %v2481_v34  ;;  %v425_v59 = vpop.f32.mrb[7].mxu1  ;;  %315 = vst.msk [vmem:[#allocation2 + $0x28] sm:$0xff] %vm180_vm0, %v297_v60  ;;  %v450_v15 = vld [vmem:[#allocation2] sm:$0xff]  ;;  %v1180_v54 = vld [vmem:[#allocation7 + $0x8] sm:$0xff]  ;;  %v1182_v60 = vld [vmem:[#allocation7 + $0x18] sm:$0xff] }
 0x17e   :  { %v426_v62 = vadd.f32 %v2481_v34, %v425_v59  ;;  %314 = vst.msk [vmem:[#allocation2 + $0x20] sm:$0xff] %vm180_vm0, %v292_v63  ;;  %v2726_v0 = vpop.f32.mrb[6].mxu0  ;;  %v810_v11 = vld [vmem:[#allocation3 + $0x18] sm:$0xff]  ;;  %v3183_v55 = vpack.c.bf16 %v1180_v54, %v1179_v53  ;;  %v1181_v59 = vld [vmem:[#allocation7 + $0x10] sm:$0xff] }
 0x17f   :  { %441 = vst.msk [vmem:[#allocation3 + $0x38] sm:$0xff] %vm180_vm0, %v431_v58  ;;  %v307_v1 = vadd.f32 %v2726_v0, %v2472_v39  ;;  %v301_v2 = vpop.f32.mrb[7].mxu0  ;;  %v899_v10 = vld [vmem:[#allocation3 + $0x10] sm:$0xff]  ;;  %v1487_v54 = vld [vmem:[%s4182_s9 + $0x18] sm:$0xff] }
 0x180   :  { %440 = vst.msk [vmem:[#allocation3 + $0x30] sm:$0xff] %vm180_vm0, %v426_v62  ;;  %v302_v4 = vadd.f32 %v2472_v39, %v301_v2  ;;  %v719_v40 = vld [vmem:[#allocation2 + $0x18] sm:$0xff]  ;;  %v1486_v53 = vld [vmem:[%s4182_s9 + $0x10] sm:$0xff] }
 0x181   :  { %317 = vst.msk [vmem:[#allocation2 + $0x38] sm:$0xff] %vm180_vm0, %v307_v1  ;;  %v630_v31 = vld [vmem:[#allocation2 + $0x10] sm:$0xff] }
 0x182   :  { %v632_v3 = vld [vmem:[#allocation3 + $0x28] sm:$0xff]  ;;  %316 = vst.msk [vmem:[#allocation2 + $0x30] sm:$0xff] %vm180_vm0, %v302_v4  ;;  %v528_v5 = vpop.f32.mrb[8].mxu0 }
 0x183   :  { %634 = vrot.lane.b32.xlu1 %v632_v3, %s3515_s3  ;;  %v721_v7 = vld [vmem:[#allocation3 + $0x20] sm:$0xff]  ;;  %v2765_v8 = vpop.f32.mrb[9].mxu0 }
 0x184   :  { %v897_v56 = vld [vmem:[#allocation2 + $0x28] sm:$0xff] }
 0x185   :  { %v808_v47 = vld [vmem:[#allocation2 + $0x20] sm:$0xff] }
 0x186   :  { %v452_v6 = vld [vmem:[#allocation3 + $0x38] sm:$0xff] }
 0x187   :  { %454 = vrot.lane.b32.xlu0 %v452_v6, %s3515_s3  ;;  %723 = vrot.lane.b32.xlu1 %v721_v7, %s3515_s3  ;;  %v543_v9 = vld [vmem:[#allocation3 + $0x30] sm:$0xff] }
 0x18b   :  { %545 = vrot.lane.b32.xlu0 %v543_v9, %s3515_s3  ;;  %901 = vrot.lane.b32.xlu1 %v899_v10, %s3515_s3 }
 0x18f   :  { %812 = vrot.lane.b32.xlu0 %v810_v11, %s3515_s3  ;;  %1078 = vrot.lane.b32.xlu1 %v1076_v12, %s3515_s3  ;;  %v3994_v11 = vld [vmem:[#allocation10] ss:$0 sm:$0xff] }
 0x193   :  { %990 = vrot.lane.b32.xlu0 %v988_v13, %s3515_s3 }
 0x1f5   :  { %v635_v30 = vpop.permute.xlu1 %634 }
 0x1f6   :  { %v637_v34 = vsel %vm180_vm0, %v630_v31, %v635_v30 }
 0x1f9   :  { %v455_v14 = vpop.permute.xlu0 %454  ;;  %v724_v39 = vpop.permute.xlu1 %723 }
 0x1fa   :  { %v457_v16 = vsel %vm180_vm0, %v450_v15, %v455_v14  ;;  %v726_v41 = vsel %vm180_vm0, %v719_v40, %v724_v39  ;;  %v1337_v40 = vld [vmem:[#allocation9 + $0x10] sm:$0xff] }
 0x1fb   :  { %v532_v19 = vadd.f32 %v528_v5, %v457_v16  ;;  %v986_v5 = vld [vmem:[#allocation2 + $0x30] sm:$0xff] }
 0x1fd   :  { %v3898_v20 = vmax.f32 %v532_v19, 0.0  ;;  %v546_v21 = vpop.permute.xlu0 %545 }
 0x1fe   :  { %v548_v24 = vsel %vm180_vm0, %v541_v22, %v546_v21 }
 0x1ff   :  { %534 = vst.msk [vmem:[#allocation2] sm:$0xff] %vm180_vm0, %v3898_v20  ;;  %2783 = vmatmul.mubr.msk.f32.vlgmr.msra.gmra.mrb[8].mxu1 %vm458_vm2, %v3898_v20 }
 0x200   :  { %3125 = vmatpush3.bf16.msra.mxu1 %v3781_v18  ;;  %2820 = vmatprep.mubr.msk.f32.mxu1 %vm3513_vm1, %v3514_v33 }
 0x201   :  { %3126 = vmatprep.subr.bf16.mxu1 %v3512_v17  ;;  %v813_v46 = vpop.permute.xlu0 %812 }
 0x202   :  { %v815_v48 = vsel %vm180_vm0, %v808_v47, %v813_v46  ;;  %v1075_v46 = vld [vmem:[#allocation2 + $0x38] sm:$0xff] }
 0x204   :  { %3128 = vmatpush3.bf16.msra.mxu1 %v3801_v23 }
 0x205   :  { %3129 = vmatprep.subr.bf16.mxu1 %v3512_v17  ;;  %v991_v4 = vpop.permute.xlu0 %990 }
 0x206   :  { %v993_v6 = vsel %vm180_vm0, %v986_v5, %v991_v4 }
 0x208   :  { %3131 = vmatpush3.bf16.msra.mxu1 %v3823_v28 }
 0x209   :  { %3132 = vmatprep.subr.bf16.mxu1 %v3512_v17 }
 0x20c   :  { %3134 = vmatpush3.bf16.msra.mxu1 %v3842_v32 }
 0x20d   :  { %3147 = vmatprep.subr.bf16.mxu1 %v3512_v17 }
 0x2d2   :  { %v617_v25 = vpop.f32.mrb[8].mxu1 }
 0x2d3   :  { %v621_v26 = vadd.f32 %v617_v25, %v548_v24  ;;  %v2784_v27 = vpop.f32.mrb[9].mxu1 }
 0x2d5   :  { %v3915_v29 = vmax.f32 %v621_v26, 0.0 }
 0x2d7   :  { %623 = vst.msk [vmem:[#allocation2 + $0x8] sm:$0xff] %vm180_vm0, %v3915_v29  ;;  %2802 = vmatmul.mubr.msk.f32.vlgmr.msra.gmra.mrb[10].mxu0 %vm458_vm2, %v3915_v29 }
 0x2d8   :  { %3137 = vmatpush3.bf16.msra.mxu0 %v3781_v18  ;;  %2839 = vmatprep.mubr.msk.f32.mxu0 %vm3513_vm1, %v3514_v33 }
 0x2d9   :  { %3138 = vmatprep.subr.bf16.mxu0 %v3512_v17 }
 0x2dc   :  { %3140 = vmatpush3.bf16.msra.mxu0 %v3801_v23 }
 0x2dd   :  { %3141 = vmatprep.subr.bf16.mxu0 %v3512_v17 }
 0x2de   :  { %v1164_v63 = vld [vmem:[#allocation2 + $0x8] sm:$0xff] }
 0x2e0   :  { %3143 = vmatpush3.bf16.msra.mxu0 %v3823_v28 }
 0x2e1   :  { %3144 = vmatprep.subr.bf16.mxu0 %v3512_v17 }
 0x2e4   :  { %3146 = vmatpush3.bf16.msra.mxu0 %v3842_v32 }
 0x2e5   :  { %3159 = vmatprep.subr.bf16.mxu0 %v3512_v17 }
 0x3aa   :  { %v706_v35 = vpop.f32.mrb[10].mxu0 }
 0x3ab   :  { %v710_v36 = vadd.f32 %v706_v35, %v637_v34  ;;  %v2803_v37 = vpop.f32.mrb[11].mxu0 }
 0x3ad   :  { %v3932_v38 = vmax.f32 %v710_v36, 0.0 }
 0x3af   :  { %712 = vst.msk [vmem:[#allocation2 + $0x10] sm:$0xff] %vm180_vm0, %v3932_v38  ;;  %2821 = vmatmul.mubr.msk.f32.vlgmr.msra.gmra.mrb[10].mxu1 %vm458_vm2, %v3932_v38 }
 0x3b0   :  { %3149 = vmatpush3.bf16.msra.mxu1 %v3781_v18  ;;  %2858 = vmatprep.mubr.msk.f32.mxu1 %vm3513_vm1, %v3514_v33 }
 0x3b1   :  { %3150 = vmatprep.subr.bf16.mxu1 %v3512_v17 }
 0x3b4   :  { %3152 = vmatpush3.bf16.msra.mxu1 %v3801_v23 }
 0x3b5   :  { %3153 = vmatprep.subr.bf16.mxu1 %v3512_v17 }
 0x3b6   :  { %v1165_v0 = vld [vmem:[#allocation2 + $0x10] sm:$0xff] }
 0x3b8   :  { %3155 = vmatpush3.bf16.msra.mxu1 %v3823_v28 }
 0x3b9   :  { %3156 = vmatprep.subr.bf16.mxu1 %v3512_v17 }
 0x3bc   :  { %3158 = vmatpush3.bf16.msra.mxu1 %v3842_v32 }
 0x3bd   :  { %3171 = vmatprep.subr.bf16.mxu1 %v3512_v17 }
 0x482   :  { %v795_v42 = vpop.f32.mrb[10].mxu1 }
 0x483   :  { %v799_v43 = vadd.f32 %v795_v42, %v726_v41  ;;  %v2822_v44 = vpop.f32.mrb[11].mxu1  ;;  %v1338_v41 = vld [vmem:[#allocation9 + $0x18] sm:$0xff]  ;;  %v1484_v42 = vld [vmem:[%s4182_s9] sm:$0xff] }
 0x484   :  { %v3195_v44 = vpack.c.bf16 %v1338_v41, %v1337_v40 }
 0x485   :  { %v3949_v45 = vmax.f32 %v799_v43, 0.0  ;;  %v1485_v43 = vld [vmem:[%s4182_s9 + $0x8] sm:$0xff] }
 0x486   :  { %v4024_v47 = vpack.c.bf16 %v1485_v43, %v1484_v42 }
 0x487   :  { %801 = vst.msk [vmem:[#allocation2 + $0x18] sm:$0xff] %vm180_vm0, %v3949_v45  ;;  %2840 = vmatmul.mubr.msk.f32.vlgmr.msra.gmra.mrb[12].mxu0 %vm458_vm2, %v3949_v45 }
 0x488   :  { %3161 = vmatpush3.bf16.msra.mxu0 %v3781_v18  ;;  %2877 = vmatprep.mubr.msk.f32.mxu0 %vm3513_vm1, %v3514_v33 }
 0x489   :  { %3162 = vmatprep.subr.bf16.mxu0 %v3512_v17 }
 0x48c   :  { %3164 = vmatpush3.bf16.msra.mxu0 %v3801_v23 }
 0x48d   :  { %3165 = vmatprep.subr.bf16.mxu0 %v3512_v17 }
 0x48e   :  { %v1166_v1 = vld [vmem:[#allocation2 + $0x18] sm:$0xff] }
 0x490   :  { %3167 = vmatpush3.bf16.msra.mxu0 %v3823_v28 }
 0x491   :  { %3168 = vmatprep.subr.bf16.mxu0 %v3512_v17 }
 0x494   :  { %3170 = vmatpush3.bf16.msra.mxu0 %v3842_v32 }
 0x495   :  { %3184 = vmatprep.subr.bf16.mxu0 %v3183_v55 }
 0x55a   :  { %v884_v49 = vpop.f32.mrb[12].mxu0 }
 0x55b   :  { %v888_v50 = vadd.f32 %v884_v49, %v815_v48  ;;  %v2841_v51 = vpop.f32.mrb[13].mxu0 }
 0x55d   :  { %v889_v52 = vmax.f32 %v888_v50, 0.0 }
 0x55f   :  { %890 = vst.msk [vmem:[#allocation2 + $0x20] sm:$0xff] %vm180_vm0, %v889_v52  ;;  %2859 = vmatmul.mubr.msk.f32.vlgmr.msra.gmra.mrb[12].mxu1 %vm458_vm2, %v889_v52 }
 0x560   :  { %3173 = vmatpush3.bf16.msra.mxu1 %v3781_v18  ;;  %2896 = vmatprep.mubr.msk.f32.mxu1 %vm3513_vm1, %v3514_v33  ;;  %v902_v18 = vpop.permute.xlu1 %901 }
 0x561   :  { %3174 = vmatprep.subr.bf16.mxu1 %v3512_v17  ;;  %v904_v57 = vsel %vm180_vm0, %v897_v56, %v902_v18 }
 0x564   :  { %3176 = vmatpush3.bf16.msra.mxu1 %v3801_v23  ;;  %v1079_v31 = vpop.permute.xlu1 %1078 }
 0x565   :  { %3177 = vmatprep.subr.bf16.mxu1 %v3512_v17  ;;  %v1081_v48 = vsel %vm180_vm0, %v1075_v46, %v1079_v31 }
 0x566   :  { %v1167_v2 = vld [vmem:[#allocation2 + $0x20] sm:$0xff] }
 0x568   :  { %3179 = vmatpush3.bf16.msra.mxu1 %v3823_v28  ;;  %v3187_v28 = vpack.c.bf16 %v1182_v60, %v1181_v59 }
 0x569   :  { %3180 = vmatprep.subr.bf16.mxu1 %v3512_v17 }
 0x56c   :  { %3182 = vmatpush3.bf16.msra.mxu1 %v3842_v32  ;;  %v1163_v32 = vld [vmem:[#allocation2] sm:$0xff] }
 0x632   :  { %v973_v58 = vpop.f32.mrb[12].mxu1 }
 0x633   :  { %v977_v23 = vadd.f32 %v973_v58, %v904_v57  ;;  %v2860_v61 = vpop.f32.mrb[13].mxu1 }
 0x635   :  { %v3977_v62 = vmax.f32 %v977_v23, 0.0 }
 0x637   :  { %979 = vst.msk [vmem:[#allocation2 + $0x28] sm:$0xff] %vm180_vm0, %v3977_v62  ;;  %2878 = vmatmul.mubr.msk.f32.vlgmr.msra.gmra.mrb[14].mxu0 %vm458_vm2, %v3977_v62 }
 0x638   :  { %3186 = vmatpush3.bf16.msra.mxu0 %v3183_v55  ;;  %2907 = vmatprep.mubr.msk.f32.mxu0 %vm180_vm0, %v1163_v32  ;;  %v4042_v55 = vpack.c.bf16 %v1487_v54, %v1486_v53 }
 0x639   :  { %3188 = vmatprep.subr.bf16.mxu0 %v3187_v28 }
 0x63c   :  { %3190 = vmatpush3.bf16.msra.mxu0 %v3187_v28 }
 0x63d   :  { %3199 = vmatprep.subr.bf16.mxu0 %v3512_v17 }
 0x63e   :  { %v1168_v3 = vld [vmem:[#allocation2 + $0x28] sm:$0xff] }
 0x63f   :  { %2908 = vmatmul.mubr.msk.f32.vlgmr.msra.gmra.mrb[16].mxu0 %vm180_vm0, %v1164_v63 }
 0x640   :  { %2910 = vmatprep.mubr.msk.f32.mxu0 %vm180_vm0, %v1165_v0  ;;  %3201 = vmatpush3.bf16.msra.mxu0 %v4024_v47 }
 0x641   :  { %3202 = vmatprep.subr.bf16.mxu0 %v3512_v17 }
 0x643   :  { %2911 = vmatmul.mubr.msk.f32.gmra.mrb[18].mxu0 %vm180_vm0, %v1166_v1 }
 0x644   :  { %2913 = vmatprep.mubr.msk.f32.mxu0 %vm180_vm0, %v1167_v2  ;;  %3204 = vmatpush3.bf16.msra.mxu0 %v4042_v55 }
 0x645   :  { %3211 = vmatprep.subr.bf16.mxu0 %v3512_v17 }
 0x647   :  { %2914 = vmatmul.mubr.msk.f32.gmra.mrb[20].mxu0 %vm180_vm0, %v1168_v3 }
 0x70a   :  { %v1062_v7 = vpop.f32.mrb[14].mxu0 }
 0x70b   :  { %v1066_v8 = vadd.f32 %v1062_v7, %v993_v6  ;;  %v2879_v9 = vpop.f32.mrb[15].mxu0 }
 0x70d   :  { %v1067_v10 = vmax.f32 %v1066_v8, 0.0 }
 0x70f   :  { %1068 = vst.msk [vmem:[#allocation2 + $0x30] sm:$0xff] %vm180_vm0, %v1067_v10  ;;  %1070 = vrot.lane.b32.xlu1 %v1067_v10, %s3516_s4  ;;  %2897 = vmatmul.mubr.msk.f32.vlgmr.msra.gmra.mrb[14].mxu1 %vm458_vm2, %v1067_v10 }
 0x712   :  { %v2909_v12 = vpop.f32.mrb[16].mxu0 }
 0x713   :  { %v1286_v13 = vadd.f32 %v2909_v12, %v3994_v11  ;;  %v1280_v14 = vpop.f32.mrb[17].mxu0  ;;  %892 = vrot.lane.b32.xlu1 %v889_v52, %s3516_s4 }
 0x714   :  { %v1281_v15 = vadd.f32 %v3994_v11, %v1280_v14 }
 0x715   :  { %1320 = vst.msk [vmem:[#allocation2 + $0x8] sm:$0xff] %vm180_vm0, %v1286_v13 }
 0x716   :  { %1319 = vst.msk [vmem:[#allocation2] sm:$0xff] %vm180_vm0, %v1281_v15  ;;  %v2912_v16 = vpop.f32.mrb[18].mxu0  ;;  %v1169_v19 = vld [vmem:[#allocation2 + $0x30] sm:$0xff] }
 0x717   :  { %v1296_v21 = vadd.f32 %v2912_v16, %v3994_v11  ;;  %v1290_v22 = vpop.f32.mrb[19].mxu0  ;;  %714 = vrot.lane.b32.xlu1 %v3932_v38, %s3516_s4  ;;  %2916 = vmatprep.mubr.msk.f32.mxu0 %vm180_vm0, %v1169_v19  ;;  %v1336_v38 = vld [vmem:[#allocation9 + $0x8] sm:$0xff] }
 0x718   :  { %v1291_v24 = vadd.f32 %v3994_v11, %v1290_v22 }
 0x719   :  { %1322 = vst.msk [vmem:[#allocation2 + $0x18] sm:$0xff] %vm180_vm0, %v1296_v21 }
 0x71a   :  { %1321 = vst.msk [vmem:[#allocation2 + $0x10] sm:$0xff] %vm180_vm0, %v1291_v24  ;;  %v2915_v25 = vpop.f32.mrb[20].mxu0 }
 0x71b   :  { %v1306_v26 = vadd.f32 %v2915_v25, %v3994_v11  ;;  %v1300_v27 = vpop.f32.mrb[21].mxu0  ;;  %536 = vrot.lane.b32.xlu1 %v3898_v20, %s3516_s4  ;;  %v1335_v20 = vld [vmem:[#allocation9] sm:$0xff] }
 0x71c   :  { %v1301_v30 = vadd.f32 %v3994_v11, %v1300_v27  ;;  %v3191_v39 = vpack.c.bf16 %v1336_v38, %v1335_v20  ;;  %v1328_v5 = vld [vmem:[#allocation2 + $0x8] sm:$0xff] }
 0x71d   :  { %1324 = vst.msk [vmem:[#allocation2 + $0x28] sm:$0xff] %vm180_vm0, %v1306_v26  ;;  %v1327_v8 = vld [vmem:[#allocation2] sm:$0xff] }
 0x71e   :  { %1323 = vst.msk [vmem:[#allocation2 + $0x20] sm:$0xff] %vm180_vm0, %v1301_v30  ;;  %3192 = vmatprep.subr.bf16.mxu1 %v3191_v39 }
 0x71f   :  { %3194 = vmatpush3.bf16.msra.mxu1 %v3191_v39 }
 0x720   :  { %3196 = vmatprep.subr.bf16.mxu1 %v3195_v44  ;;  %v1330_v12 = vld [vmem:[#allocation2 + $0x18] sm:$0xff] }
 0x723   :  { %3198 = vmatpush3.bf16.msra.mxu1 %v3195_v44 }
 0x724   :  { %3205 = vmatprep.subr.bf16.mxu1 %v3512_v17  ;;  %v1332_v19 = vld [vmem:[#allocation2 + $0x28] sm:$0xff] }
 0x725   :  { %v1331_v24 = vld [vmem:[#allocation2 + $0x20] sm:$0xff] }
 0x781   :  { %v1071_v34 = vpop.permute.xlu1 %1070 }
 0x782   :  { %1073 = vst.msk [vmem:[#allocation3 + $0x8] sm:$0xff] %vm180_vm0, %v1071_v34 }
 0x785   :  { %v893_v35 = vpop.permute.xlu1 %892 }
 0x786   :  { %895 = vst.msk [vmem:[#allocation3 + $0x18] sm:$0xff] %vm180_vm0, %v893_v35 }
 0x789   :  { %v715_v36 = vpop.permute.xlu1 %714  ;;  %v1172_v58 = vld [vmem:[#allocation3 + $0x8] sm:$0xff] }
 0x78a   :  { %717 = vst.msk [vmem:[#allocation3 + $0x28] sm:$0xff] %vm180_vm0, %v715_v36 }
 0x78d   :  { %v537_v37 = vpop.permute.xlu1 %536  ;;  %v1174_v23 = vld [vmem:[#allocation3 + $0x18] sm:$0xff] }
 0x78e   :  { %539 = vst.msk [vmem:[#allocation3 + $0x38] sm:$0xff] %vm180_vm0, %v537_v37 }
 0x795   :  { %v4077_v32 = vld [vmem:[#allocation3 + $0x38] sm:$0xff] }
 0x7e2   :  { %v1150_v49 = vpop.f32.mrb[14].mxu1 }
 0x7e3   :  { %v1154_v50 = vadd.f32 %v1150_v49, %v1081_v48  ;;  %v2898_v51 = vpop.f32.mrb[15].mxu1 }
 0x7e5   :  { %v4030_v52 = vmax.f32 %v1154_v50, 0.0 }
 0x7e7   :  { %1156 = vst.msk [vmem:[#allocation2 + $0x38] sm:$0xff] %vm180_vm0, %v4030_v52  ;;  %1158 = vrot.lane.b32.xlu0 %v4030_v52, %s3516_s4 }
 0x7eb   :  { %981 = vrot.lane.b32.xlu0 %v3977_v62, %s3516_s4  ;;  %v1176_v62 = vld [vmem:[#allocation3 + $0x28] sm:$0xff] }
 0x7ee   :  { %v1170_v18 = vld [vmem:[#allocation2 + $0x38] sm:$0xff] }
 0x7ef   :  { %803 = vrot.lane.b32.xlu0 %v3949_v45, %s3516_s4  ;;  %2917 = vmatmul.mubr.msk.f32.gmra.mrb[22].mxu0 %vm180_vm0, %v1170_v18 }
 0x7f0   :  { %2947 = vmatprep.mubr.msk.f32.mxu0 %vm3513_vm1, %v3514_v33 }
 0x7f3   :  { %625 = vrot.lane.b32.xlu0 %v3915_v29, %s3516_s4  ;;  %2948 = vmatmul.mubr.f32.vlgmr.msra.gmra.mrb[24].mxu0 %v3514_v33 }
 0x7f4   :  { %3213 = vmatpush3.bf16.msra.mxu0 %v4024_v47  ;;  %2969 = vmatprep.mubr.msk.f32.mxu0 %vm3513_vm1, %v3514_v33 }
 0x7f5   :  { %3214 = vmatprep.subr.bf16.mxu0 %v3512_v17 }
 0x7f8   :  { %3216 = vmatpush3.bf16.msra.mxu0 %v4042_v55 }
 0x7f9   :  { %3223 = vmatprep.subr.bf16.mxu0 %v3512_v17 }
 0x859   :  { %v1159_v45 = vpop.permute.xlu0 %1158 }
 0x85a   :  { %1161 = vst.msk [vmem:[#allocation3] sm:$0xff] %vm180_vm0, %v1159_v45 }
 0x85d   :  { %v982_v56 = vpop.permute.xlu0 %981 }
 0x85e   :  { %984 = vst.msk [vmem:[#allocation3 + $0x10] sm:$0xff] %vm180_vm0, %v982_v56 }
 0x861   :  { %v804_v29 = vpop.permute.xlu0 %803  ;;  %v1171_v57 = vld [vmem:[#allocation3] sm:$0xff] }
 0x862   :  { %806 = vst.msk [vmem:[#allocation3 + $0x20] sm:$0xff] %vm180_vm0, %v804_v29  ;;  %2927 = vmatprep.mubr.msk.f32.mxu1 %vm180_vm0, %v1171_v57 }
 0x863   :  { %2928 = vmatmul.mubr.msk.f32.vlgmr.msra.gmra.mrb[16].mxu1 %vm180_vm0, %v1172_v58 }
 0x864   :  { %3207 = vmatpush3.bf16.msra.mxu1 %v4024_v47 }
 0x865   :  { %v626_v59 = vpop.permute.xlu0 %625  ;;  %v1173_v60 = vld [vmem:[#allocation3 + $0x10] sm:$0xff]  ;;  %3208 = vmatprep.subr.bf16.mxu1 %v3512_v17 }
 0x866   :  { %628 = vst.msk [vmem:[#allocation3 + $0x30] sm:$0xff] %vm180_vm0, %v626_v59  ;;  %2930 = vmatprep.mubr.msk.f32.mxu1 %vm180_vm0, %v1173_v60  ;;  %v2099_v60 = vld [vmem:[#allocation13] sm:$0xff] }
 0x867   :  { %2931 = vmatmul.mubr.msk.f32.gmra.mrb[18].mxu1 %vm180_vm0, %v1174_v23  ;;  %v2100_v23 = vld [vmem:[#allocation13 + $0x8] sm:$0xff] }
 0x868   :  { %3210 = vmatpush3.bf16.msra.mxu1 %v4042_v55 }
 0x869   :  { %v1175_v61 = vld [vmem:[#allocation3 + $0x20] sm:$0xff]  ;;  %3217 = vmatprep.subr.bf16.mxu1 %v3512_v17 }
 0x86a   :  { %2933 = vmatprep.mubr.msk.f32.mxu1 %vm180_vm0, %v1175_v61 }
 0x86b   :  { %2934 = vmatmul.mubr.msk.f32.gmra.mrb[20].mxu1 %vm180_vm0, %v1176_v62 }
 0x86d   :  { %v1177_v28 = vld [vmem:[#allocation3 + $0x30] sm:$0xff] }
 0x86e   :  { %2936 = vmatprep.mubr.msk.f32.mxu1 %vm180_vm0, %v1177_v28 }
 0x86f   :  { %2937 = vmatmul.mubr.msk.f32.gmra.mrb[22].mxu1 %vm180_vm0, %v4077_v32 }
 0x870   :  { %2958 = vmatprep.mubr.msk.f32.mxu1 %vm3513_vm1, %v3514_v33 }
 0x8c2   :  { %v2918_v63 = vpop.f32.mrb[22].mxu0 }
 0x8c3   :  { %v1316_v0 = vadd.f32 %v2918_v63, %v3994_v11  ;;  %v1310_v1 = vpop.f32.mrb[23].mxu0 }
 0x8c4   :  { %v1311_v2 = vadd.f32 %v3994_v11, %v1310_v1  ;;  %v1329_v11 = vld [vmem:[#allocation2 + $0x10] sm:$0xff] }
 0x8c5   :  { %1326 = vst.msk [vmem:[#allocation2 + $0x38] sm:$0xff] %vm180_vm0, %v1316_v0  ;;  %v3248_v0 = vpack.c.bf16 %v2100_v23, %v2099_v60 }
 0x8c6   :  { %1325 = vst.msk [vmem:[#allocation2 + $0x30] sm:$0xff] %vm180_vm0, %v1311_v2  ;;  %v1557_v3 = vpop.f32.mrb[24].mxu0  ;;  %v2101_v2 = vld [vmem:[#allocation13 + $0x10] sm:$0xff] }
 0x8c7   :  { %v2949_v4 = vpop.f32.mrb[25].mxu0 }
 0x8c8   :  { %v2096_v4 = vld [vmem:[#allocation12 + $0x8] sm:$0xff] }
 0x8cc   :  { %v1334_v31 = vld [vmem:[#allocation2 + $0x38] sm:$0xff] }
 0x8cd   :  { %v1333_v36 = vld [vmem:[#allocation2 + $0x30] sm:$0xff] }
 0x936   :  { %v2929_v6 = vpop.f32.mrb[16].mxu1 }
 0x937   :  { %v1469_v7 = vadd.f32 %v2929_v6, %v1328_v5  ;;  %v1429_v9 = vpop.f32.mrb[17].mxu1 }
 0x938   :  { %v1468_v10 = vadd.f32 %v1429_v9, %v1327_v8 }
 0x939   :  { %1477 = vst.msk [vmem:[#allocation2 + $0x8] sm:$0xff] %vm180_vm0, %v1469_v7 }
 0x93a   :  { %1476 = vst.msk [vmem:[#allocation2] sm:$0xff] %vm180_vm0, %v1468_v10  ;;  %v2932_v13 = vpop.f32.mrb[18].mxu1 }
 0x93b   :  { %v1471_v14 = vadd.f32 %v2932_v13, %v1330_v12  ;;  %v1439_v15 = vpop.f32.mrb[19].mxu1  ;;  %v2097_v12 = vld [vmem:[#allocation12 + $0x10] sm:$0xff]  ;;  %v2098_v13 = vld [vmem:[#allocation12 + $0x18] sm:$0xff] }
 0x93c   :  { %v1470_v16 = vadd.f32 %v1439_v15, %v1329_v11  ;;  %v2258_v11 = vld [vmem:[#allocation15 + $0x8] sm:$0xff] }
 0x93d   :  { %1479 = vst.msk [vmem:[#allocation2 + $0x18] sm:$0xff] %vm180_vm0, %v1471_v14  ;;  %v3257_v14 = vpack.c.bf16 %v2098_v13, %v2097_v12 }
 0x93e   :  { %1478 = vst.msk [vmem:[#allocation2 + $0x10] sm:$0xff] %vm180_vm0, %v1470_v16  ;;  %v2935_v21 = vpop.f32.mrb[20].mxu1 }
 0x93f   :  { %v1473_v22 = vadd.f32 %v2935_v21, %v1332_v19  ;;  %v1449_v25 = vpop.f32.mrb[21].mxu1  ;;  %v2259_v21 = vld [vmem:[#allocation15 + $0x10] sm:$0xff] }
 0x940   :  { %v1472_v26 = vadd.f32 %v1449_v25, %v1331_v24  ;;  %v1563_v39 = vld [vmem:[#allocation2 + $0x8] sm:$0xff] }
 0x941   :  { %1481 = vst.msk [vmem:[#allocation2 + $0x28] sm:$0xff] %vm180_vm0, %v1473_v22  ;;  %v1488_v27 = vld [vmem:[#allocation2] sm:$0xff] }
 0x942   :  { %1480 = vst.msk [vmem:[#allocation2 + $0x20] sm:$0xff] %vm180_vm0, %v1472_v26  ;;  %v1561_v30 = vadd.f32 %v1557_v3, %v1488_v27  ;;  %v2938_v34 = vpop.f32.mrb[22].mxu1  ;;  %v2102_v3 = vld [vmem:[#allocation13 + $0x18] sm:$0xff]  ;;  %v2261_v25 = vld [vmem:[#allocation16] sm:$0xff]  ;;  %v2262_v26 = vld [vmem:[#allocation16 + $0x8] sm:$0xff] }
 0x943   :  { %v1475_v35 = vadd.f32 %v2938_v34, %v1334_v31  ;;  %v1459_v37 = vpop.f32.mrb[23].mxu1  ;;  %v2260_v22 = vld [vmem:[#allocation15 + $0x18] sm:$0xff]  ;;  %v3260_v27 = vpack.c.bf16 %v2262_v26, %v2261_v25 }
 0x944   :  { %v1562_v20 = vmax.f32 %v1561_v30, 0.0  ;;  %v1474_v38 = vadd.f32 %v1459_v37, %v1333_v36  ;;  %v1715_v51 = vld [vmem:[#allocation2 + $0x18] sm:$0xff]  ;;  %v3269_v24 = vpack.c.bf16 %v2260_v22, %v2259_v21 }
 0x945   :  { %1483 = vst.msk [vmem:[#allocation2 + $0x38] sm:$0xff] %vm180_vm0, %v1475_v35  ;;  %v1639_v44 = vld [vmem:[#allocation2 + $0x10] sm:$0xff]  ;;  %v2264_v31 = vld [vmem:[#allocation16 + $0x18] sm:$0xff] }
 0x946   :  { %1482 = vst.msk [vmem:[#allocation2 + $0x30] sm:$0xff] %vm180_vm0, %v1474_v38  ;;  %2959 = vmatmul.mubr.msk.f32.vlgmr.msra.gmra.mrb[24].mxu1 %vm180_vm0, %v1562_v20  ;;  %v2263_v30 = vld [vmem:[#allocation16 + $0x10] sm:$0xff]  ;;  %v2523_v38 = vld [vmem:[%s4185_s12] ss:$0 sm:$0xff]  ;;  %s3518_s12 = smov [#allocation18]  }
 0x947   :  { %3219 = vmatpush3.bf16.msra.mxu1 %v4024_v47  ;;  %2980 = vmatprep.mubr.msk.f32.mxu1 %vm3513_vm1, %v3514_v33  ;;  %v3263_v34 = vpack.c.bf16 %v2264_v31, %v2263_v30 }
 0x948   :  { %3220 = vmatprep.subr.bf16.mxu1 %v3512_v17  ;;  %v1867_v61 = vld [vmem:[#allocation2 + $0x28] sm:$0xff] }
 0x949   :  { %v1791_v56 = vld [vmem:[#allocation2 + $0x20] sm:$0xff] }
 0x94b   :  { %3222 = vmatpush3.bf16.msra.mxu1 %v4042_v55 }
 0x94c   :  { %3229 = vmatprep.subr.bf16.mxu1 %v3512_v17 }
 0x94d   :  { %v1943_v5 = vld [vmem:[#allocation2 + $0x30] sm:$0xff] }
 0xa19   :  { %v1633_v40 = vpop.f32.mrb[24].mxu1 }
 0xa1a   :  { %v1637_v41 = vadd.f32 %v1633_v40, %v1563_v39  ;;  %v2960_v42 = vpop.f32.mrb[25].mxu1 }
 0xa1c   :  { %v1638_v43 = vmax.f32 %v1637_v41, 0.0 }
 0xa1e   :  { %2970 = vmatmul.mubr.msk.f32.vlgmr.msra.gmra.mrb[26].mxu0 %vm180_vm0, %v1638_v43 }
 0xa1f   :  { %3225 = vmatpush3.bf16.msra.mxu0 %v4024_v47  ;;  %2991 = vmatprep.mubr.msk.f32.mxu0 %vm3513_vm1, %v3514_v33 }
 0xa20   :  { %3226 = vmatprep.subr.bf16.mxu0 %v3512_v17 }
 0xa23   :  { %3228 = vmatpush3.bf16.msra.mxu0 %v4042_v55 }
 0xa24   :  { %3235 = vmatprep.subr.bf16.mxu0 %v3512_v17 }
 0xaf1   :  { %v1709_v46 = vpop.f32.mrb[26].mxu0 }
 0xaf2   :  { %v1713_v48 = vadd.f32 %v1709_v46, %v1639_v44  ;;  %v2971_v49 = vpop.f32.mrb[27].mxu0  ;;  %v2526_v46 = vld [vmem:[%s4188_s15] ss:$0 sm:$0xff]  ;;  %s2459_s15 = sshll.u32 %s3518_s12, 4  ;;  %s2460_s15 = int_to_ptr.vmem [resolvable:$true] %s2459_s15 }
 0xaf3   :  { %s3468_s0 = scalar_lea.vmem %s2460_s15, 128  ;;  %p3473_p9 = scmp.lt.s32.totalorder %s2460_s15, %s2460_s15 }
 0xaf4   :  { %v1714_v50 = vmax.f32 %v1713_v48, 0.0  ;;  %p3469_p8 = scmp.ne.s32.totalorder %s2460_s15, %s3468_s0  ;;  %p3474_p10 = scmp.lt.s32.totalorder %s3468_s0, %s3468_s0 }
 0xaf6   :  { %2981 = vmatmul.mubr.msk.f32.vlgmr.msra.gmra.mrb[26].mxu1 %vm180_vm0, %v1714_v50  ;;  %p3475_p11 = por %p3474_p10, %p3473_p9 }
 0xaf7   :  { %3231 = vmatpush3.bf16.msra.mxu1 %v4024_v47  ;;  %3002 = vmatprep.mubr.msk.f32.mxu1 %vm3513_vm1, %v3514_v33 }
 0xaf8   :  { %3232 = vmatprep.subr.bf16.mxu1 %v3512_v17  ;;  %p3476_p12 = pnand %p3475_p11, %p3469_p8 }
 0xafb   :  { %3234 = vmatpush3.bf16.msra.mxu1 %v4042_v55 }
 0xafc   :  { %3241 = vmatprep.subr.bf16.mxu1 %v3512_v17 }
 0xbc9   :  { %v1785_v53 = vpop.f32.mrb[26].mxu1 }
 0xbca   :  { %v1789_v54 = vadd.f32 %v1785_v53, %v1715_v51  ;;  %v2982_v18 = vpop.f32.mrb[27].mxu1 }
 0xbcc   :  { %v1790_v45 = vmax.f32 %v1789_v54, 0.0 }
 0xbce   :  { %2992 = vmatmul.mubr.msk.f32.vlgmr.msra.gmra.mrb[28].mxu0 %vm180_vm0, %v1790_v45 }
 0xbcf   :  { %3237 = vmatpush3.bf16.msra.mxu0 %v4024_v47  ;;  %3013 = vmatprep.mubr.msk.f32.mxu0 %vm3513_vm1, %v3514_v33 }
 0xbd0   :  { %3238 = vmatprep.subr.bf16.mxu0 %v3512_v17 }
 0xbd3   :  { %3240 = vmatpush3.bf16.msra.mxu0 %v4042_v55 }
 0xbd4   :  { %3247 = vmatprep.subr.bf16.mxu0 %v3512_v17 }
 0xca1   :  { %v1861_v29 = vpop.f32.mrb[28].mxu0 }
 0xca2   :  { %v1865_v57 = vadd.f32 %v1861_v29, %v1791_v56  ;;  %v2993_v58 = vpop.f32.mrb[29].mxu0 }
 0xca3   :  { %v2419_v58 = vlaneseq }
 0xca4   :  { %v1866_v59 = vmax.f32 %v1865_v57, 0.0 }
 0xca6   :  { %3003 = vmatmul.mubr.msk.f32.vlgmr.msra.gmra.mrb[28].mxu1 %vm180_vm0, %v1866_v59 }
 0xca7   :  { %3243 = vmatpush3.bf16.msra.mxu1 %v4024_v47  ;;  %3024 = vmatprep.mubr.msk.f32.mxu1 %vm3513_vm1, %v3514_v33  ;;  %v3251_v47 = vpack.c.bf16 %v2102_v3, %v2101_v2 }
 0xca8   :  { %3244 = vmatprep.subr.bf16.mxu1 %v3512_v17 }
 0xcab   :  { %3246 = vmatpush3.bf16.msra.mxu1 %v4042_v55  ;;  %v2095_v55 = vld [vmem:[#allocation12] sm:$0xff] }
 0xcac   :  { %3253 = vmatprep.subr.bf16.mxu1 %v3512_v17  ;;  %v3254_v9 = vpack.c.bf16 %v2096_v4, %v2095_v55 }
 0xd79   :  { %v1937_v62 = vpop.f32.mrb[28].mxu1 }
 0xd7a   :  { %v1941_v28 = vadd.f32 %v1937_v62, %v1867_v61  ;;  %v3004_v63 = vpop.f32.mrb[29].mxu1  ;;  %v2420_v62 = vand.u32 127, %v2419_v58 }
 0xd7c   :  { %v1942_v1 = vmax.f32 %v1941_v28, 0.0  ;;  %vm2421_vm5 = vcmp.lt.s32.totalorder %v2420_v62, 16 }
 0xd7e   :  { %3014 = vmatmul.mubr.msk.f32.vlgmr.msra.gmra.mrb[30].mxu0 %vm180_vm0, %v1942_v1 }
 0xd7f   :  { %3249 = vmatpush3.bf16.msra.mxu0 %v3248_v0  ;;  %3035 = vmatprep.mubr.msk.f32.mxu0 %vm3513_vm1, %v3514_v33 }
 0xd80   :  { %3250 = vmatprep.subr.bf16.mxu0 %v3512_v17 }
 0xd83   :  { %3252 = vmatpush3.bf16.msra.mxu0 %v3251_v47 }
 0xd84   :  { %3259 = vmatprep.subr.bf16.mxu0 %v3512_v17 }
 0xd86   :  { %3036 = vmatmul.mubr.msk.f32.vlgmr.msra.gmra.mrb[32].mxu0 %vm180_vm0, %v4077_v32  ;;  %v2257_v32 = vld [vmem:[#allocation15] sm:$0xff] }
 0xd87   :  { %3057 = vmatprep.mubr.msk.f32.mxu0 %vm3513_vm1, %v3514_v33  ;;  %v3266_v19 = vpack.c.bf16 %v2258_v11, %v2257_v32  ;;  %3261 = vmatpush3.bf16.msra.mxu0 %v3260_v27 }
 0xd88   :  { %3262 = vmatprep.subr.bf16.mxu0 %v3512_v17 }
 0xd8b   :  { %3264 = vmatpush3.bf16.msra.mxu0 %v3263_v34 }
 0xe51   :  { %v2013_v6 = vpop.f32.mrb[30].mxu0 }
 0xe52   :  { %v2017_v7 = vadd.f32 %v2013_v6, %v1943_v5  ;;  %v3015_v8 = vpop.f32.mrb[31].mxu0 }
 0xe54   :  { %v2018_v10 = vmax.f32 %v2017_v7, 0.0 }
 0xe56   :  { %3025 = vmatmul.mubr.msk.f32.vlgmr.msra.gmra.mrb[30].mxu1 %vm180_vm0, %v2018_v10 }
 0xe57   :  { %3255 = vmatpush3.bf16.msra.mxu1 %v3254_v9  ;;  %3046 = vmatprep.mubr.msk.f32.mxu1 %vm3513_vm1, %v3514_v33 }
 0xe58   :  { %3256 = vmatprep.subr.bf16.mxu1 %v3512_v17 }
 0xe59   :  { %v2172_v15 = vpop.f32.mrb[32].mxu0 }
 0xe5a   :  { %v3037_v16 = vpop.f32.mrb[33].mxu0 }
 0xe5b   :  { %3258 = vmatpush3.bf16.msra.mxu1 %v3257_v14 }
 0xe5c   :  { %3265 = vmatprep.subr.bf16.mxu1 %v3512_v17 }
 0xe5e   :  { %3047 = vmatmul.mubr.msk.f32.vlgmr.msra.gmra.mrb[32].mxu1 %vm180_vm0, %v4030_v52  ;;  %v2019_v52 = vld [vmem:[#allocation2 + $0x38] sm:$0xff] }
 0xe5f   :  { %3267 = vmatpush3.bf16.msra.mxu1 %v3266_v19  ;;  %3068 = vmatprep.mubr.msk.f32.mxu1 %vm3513_vm1, %v3514_v33 }
 0xe60   :  { %3268 = vmatprep.subr.bf16.mxu1 %v3512_v17 }
 0xe63   :  { %3270 = vmatpush3.bf16.msra.mxu1 %v3269_v24 }
 0xf29   :  { %v2089_v35 = vpop.f32.mrb[30].mxu1 }
 0xf2a   :  { %v2093_v36 = vadd.f32 %v2089_v35, %v2019_v52  ;;  %v3026_v33 = vpop.f32.mrb[31].mxu1 }
 0xf2c   :  { %v2094_v37 = vmax.f32 %v2093_v36, 0.0 }
 0xf2e   :  { %2442 = vrot.lane.b32.xlu0 %v2094_v37, %s3515_s3  ;;  %3069 = vmatmul.mubr.msk.f32.vlgmr.msra.gmra.mrb[34].mxu1 %vm180_vm0, %v2094_v37 }
 0xf31   :  { %v2244_v20 = vpop.f32.mrb[32].mxu1 }
 0xf32   :  { %v2245_v39 = vadd.f32 %v2244_v20, %v2172_v15  ;;  %v3048_v17 = vpop.f32.mrb[33].mxu1 }
 0xf34   :  { %v2255_v40 = vadd.f32 %v2523_v38, %v2245_v39 }
 0xf36   :  { %v2256_v41 = vmax.f32 %v2255_v40, 0.0 }
 0xf38   :  { %2445 = vrot.lane.b32.xlu1 %v2256_v41, %s3517_s28  ;;  %3058 = vmatmul.mubr.msk.f32.vlgmr.msra.gmra.mrb[34].mxu0 %vm180_vm0, %v2256_v41 }
 0xfa0   :  { %v2443_v2 = vpop.permute.xlu0 %2442 }
 0xfaa   :  { %v2446_v47 = vpop.permute.xlu1 %2445 }
0x1001   :  { %v2407_v42 = vpop.f32.mrb[34].mxu1 }
0x1002   :  { %v3070_v43 = vpop.f32.mrb[35].mxu1 }
0x100b   :  { %v2334_v44 = vpop.f32.mrb[34].mxu0 }
0x100c   :  { %v2408_v48 = vadd.f32 %v2407_v42, %v2334_v44  ;;  %v3059_v49 = vpop.f32.mrb[35].mxu0 }
0x100e   :  { %v2418_v50 = vadd.f32 %v2526_v46, %v2408_v48 }
0x1010   :  { %v2425_v51 = vand.u32 2147483647, %v2418_v50  ;;  %v2422_v61 = vmax.f32 %v2418_v50, 0.0  ;;  %vm2423_vm4 = vcmp.ne.f32.partialorder %v2418_v50, %v2418_v50 }
0x1012   :  { %v2426_v53 = vsub.f32 0.0, %v2425_v51 }
0x1014   :  { %v2427_v54 = vmul.f32 1.442695, %v2426_v53 }
0x1016   :  { %3288 = vpow2.f32 %v2427_v54 }
0x1020   :  { %v3289_v18 = vpop.eup %3288 }
0x1021   :  { %v2429_v45 = vadd.f32 1.0, %v3289_v18  ;;  %v2432_v56 = vmul.f32 -0.5, %v3289_v18  ;;  %v2435_v57 = vand.u32 2147483647, %v3289_v18 }
0x1023   :  { %3290 = vlog2.f32 %v2429_v45  ;;  %v2433_v29 = vadd.f32 1.0, %v2432_v56  ;;  %vm2436_vm3 = vcmp.lt.f32.partialorder %v2435_v57, 0.0004427343 }
0x1025   :  { %v2434_v23 = vmul.f32 %v3289_v18, %v2433_v29 }
0x102d   :  { %v3291_v59 = vpop.eup %3290 }
0x102e   :  { %v2431_v60 = vmul.f32 0.6931472, %v3291_v59 }
0x1030   :  { %v2437_v28 = vsel %vm2436_vm3, %v2434_v23, %v2431_v60 }
0x1031   :  { %v2438_v63 = vadd.f32 %v2437_v28, %v2422_v61 }
0x1033   :  { %v2439_v0 = vsel %vm2423_vm4, %v2418_v50, %v2438_v63 }
0x1034   :  { %v2440_v1 = vadd.f32 0.0001, %v2439_v0 }
0x1036   :  { %v2441_v3 = vsel %vm2421_vm5, %v2418_v50, %v2440_v1 }
0x1037   :  { %v2448_v55 = vsel %vm180_vm0, %v2441_v3, %v2443_v2 }
0x1038   :  { %v2449_v4 = vsel %vm458_vm2, %v2448_v55, %v2446_v47 }
0x1039   :  { %v2451_v5 = vsel %vm2450_vm6, %v2449_v4, 0.0 }
0x103a   :  { %2452 = vst [vmem:[#allocation18] sm:$0xff] %v2451_v5 }
0x103b   :  { %3479 = shalt.err (!%p3476_p12)
}
0x103c   :  { %s3480_s8 = scalar_lea.hbm %s4189_s16, 128 }
0x103d   :  { %p3481_p13 = scmp.ne.s32.totalorder %s4189_s16, %s3480_s8  ;;  %p3484_p0 = scmp.lt.u32.totalorder %s3480_s8, %s4189_s16 }
0x103f   :  { %p3486_p1 = pnand %p3484_p0, %p3481_p13 }
0x1041   :  { %3489 = shalt.err (!%p3486_p1)
}
0x1042   :  { %2462 = dma.vmem_to_hbm [thread:$0]  %s2460_s15, 128, %s4189_s16, [#allocation6]  }
0x1043   :  { %3500 = dma.done.wait [#allocation6], 128  }
0x1044   :  { %3501 = vsyncadd [#allocation6], 4294967168 }
0x1045   :  { %2466 = vsyncpa [#allocation5], 1 }
0x1046   :  { %2467 = vsyncpa [#allocation8], 1 }
0x1047   :  { %2468 = vsyncpa [#allocation11], 1 }
0x1048   :  { %2469 = vsyncpa [#allocation14], 1 }
0x1049   :  { %2470 = vsyncpa [#allocation17], 1 }
0x104a   :  { %2471 = vsyncpa [#allocation6], 1 }

</bundles_post_ra>
